<compile_context>
chip_gen: v5e
topology: v5e:2x2
jax: 0.10.0
libtpu: 0.0.40
codegen_flags: <defaults>
</compile_context>

<pallas_src>
from functools import partial

import jax
import jax.numpy as jnp
from jax.experimental import pallas as pl
from jax.experimental.pallas import tpu as pltpu


# ---------------------------------------------------------------------------
# Fused Pallas kernel (factory closes over static sizes / layer count)
# ---------------------------------------------------------------------------
def _make_fused_kernel(num_layers, S, Bp, H):
    def kernel(*args):
        it = iter(args)
        # ---- inputs -------------------------------------------------------
        x_ref = next(it)                                   # (S*Bp, Din) time-major
        layer_refs = [(next(it), next(it), next(it))       # (wih_t, whh_t, bias)
                      for _ in range(num_layers)]
        wlin_ref = next(it)                                # (H, Opad)
        blin_ref = next(it)                                # (1, Opad)
        h0_ref = next(it)                                  # (L, Bp, H)
        c0_ref = next(it)                                  # (L, Bp, H)
        # ---- outputs ------------------------------------------------------
        out_ref = next(it)                                 # (S*Bp, Opad)
        hn_ref = next(it)                                  # (L, Bp, H)
        cn_ref = next(it)                                  # (L, Bp, H)
        # ---- scratch ------------------------------------------------------
        g0_sc = next(it)                                   # (S*Bp, 4H)
        y_sc = next(it)                                    # (S*Bp, H)

        # Layer-0 input projection hoisted to ONE bulk GEMM over all timesteps.
        wih0_ref, whh0_ref, b0_ref = layer_refs[0]
        g0_sc[...] = (jnp.dot(x_ref[...], wih0_ref[...],
                              preferred_element_type=jnp.float32) + b0_ref[...])

        # Recurrent / inter-layer weights held in vregs for the whole sequence.
        whh = [layer_refs[l][1][...] for l in range(num_layers)]
        wih = [layer_refs[l][0][...] if l > 0 else None for l in range(num_layers)]
        bia = [layer_refs[l][2][...] if l > 0 else None for l in range(num_layers)]

        h = [h0_ref[l] for l in range(num_layers)]
        c = [c0_ref[l] for l in range(num_layers)]

        def cell(g, c_prev):
            # i/f/o columns of the weights/bias were pre-scaled by 0.5 in the
            # wrapper, so a SINGLE full-width tanh yields:
            #   sigmoid(x) = 0.5*tanh(x/2) + 0.5 on the i/f/o lanes,
            #   tanh(x)    = t              on the g lanes.
            t = jnp.tanh(g)                         # (Bp, 4H): one EUP pass
            s = 0.5 * t + 0.5                       # one full-width VPU FMA
            c_new = s[:, H:2 * H] * c_prev + s[:, 0:H] * t[:, 2 * H:3 * H]
            h_new = s[:, 3 * H:4 * H] * jnp.tanh(c_new)
            return h_new, c_new

        # Wavefront-friendly time loop: layer l>=1 consumes layer l-1's h at the
        # SAME timestep, so layer0(t+1) and layer1(t) carry no mutual dependency
        # and the scheduler overlaps their MXU matmuls.  Static unroll (S small).
        # TODO(synk): at larger S / num_layers switch to lax.fori_loop(unroll=k)
        #             to bound vreg live ranges.
        for t in range(S):
            lo, hi = t * Bp, (t + 1) * Bp            # Bp is a multiple of 8 ->
            g = g0_sc[lo:hi, :] + jnp.dot(           # 8-sublane aligned slices
                h[0], whh[0], preferred_element_type=jnp.float32)
            h[0], c[0] = cell(g, c[0])
            x_t = h[0]
            for l in range(1, num_layers):
                g = (jnp.dot(x_t, wih[l], preferred_element_type=jnp.float32)
                     + bia[l]
                     + jnp.dot(h[l], whh[l], preferred_element_type=jnp.float32))
                h[l], c[l] = cell(g, c[l])
                x_t = h[l]
            y_sc[lo:hi, :] = x_t                     # last-layer output, aligned

        for l in range(num_layers):
            hn_ref[l] = h[l]
            cn_ref[l] = c[l]

        # Fused linear head on the VMEM-resident last-layer outputs.  Output is
        # lane-padded to a multiple of 128 -> dense (unmasked) HBM writeback.
        out_ref[...] = (jnp.dot(y_sc[...], wlin_ref[...],
                                preferred_element_type=jnp.float32) + blin_ref[...])

    return kernel


# ---------------------------------------------------------------------------
# One-time parameter preprocessing (run ONCE when params are loaded)
# ---------------------------------------------------------------------------
def prepare_params(params):
    """Transposes, b_ih+b_hh fusion, 0.5 gate pre-scale (i/f/o), head padding."""
    H = params["lstm"][0]["w_hh"].shape[1]
    O = params["linear"]["w"].shape[0]
    Opad = ((O + 127) // 128) * 128
    # Gate column order is [i, f, g, o]; scale i/f/o by 0.5 so one tanh covers
    # all gates inside the kernel (sigmoid(x) == 0.5*tanh(x/2)+0.5).
    col_scale = jnp.concatenate([jnp.full((H,), 0.5, jnp.float32),
                                 jnp.full((H,), 0.5, jnp.float32),
                                 jnp.ones((H,), jnp.float32),
                                 jnp.full((H,), 0.5, jnp.float32)])
    lstm = []
    for p in params["lstm"]:
        wih_t = jnp.transpose(p["w_ih"]).astype(jnp.float32) * col_scale
        whh_t = jnp.transpose(p["w_hh"]).astype(jnp.float32) * col_scale
        b = ((p["b_ih"] + p["b_hh"]).astype(jnp.float32)
             * col_scale).reshape(1, 4 * H)
        lstm.append((wih_t, whh_t, b))
    wlin = jnp.zeros((H, Opad), jnp.float32).at[:, :O].set(
        jnp.transpose(params["linear"]["w"]).astype(jnp.float32))
    blin = jnp.zeros((1, Opad), jnp.float32).at[:, :O].set(
        params["linear"]["b"].reshape(1, O).astype(jnp.float32))
    return tuple(lstm), wlin, blin, O


# ---------------------------------------------------------------------------
# Wrapper (single pallas_call for the whole network forward)
# ---------------------------------------------------------------------------
@partial(jax.jit, static_argnames=("output_size",))
def network_forward(x, lstm_params, wlin, blin, h0, c0, *, output_size):
    """x: (B, S, input_size) batch_first.  Returns (linear_out, (h_n, c_n))."""
    B, S, Din = x.shape
    L = len(lstm_params)
    H = lstm_params[0][1].shape[0]
    Opad = wlin.shape[1]
    Bp = ((B + 7) // 8) * 8                # pad batch to 8-sublane tile boundary

    # time-major, batch-padded, flattened input: row index = t*Bp + b
    x_tm = jnp.transpose(x, (1, 0, 2)).astype(jnp.float32)        # (S, B, Din)
    x_tm = jnp.pad(x_tm, ((0, 0), (0, Bp - B), (0, 0))).reshape(S * Bp, Din)
    h0p = jnp.pad(h0.astype(jnp.float32), ((0, 0), (0, Bp - B), (0, 0)))
    c0p = jnp.pad(c0.astype(jnp.float32), ((0, 0), (0, Bp - B), (0, 0)))

    args = [x_tm]
    for (wih_t, whh_t, b) in lstm_params:
        args += [wih_t, whh_t, b]
    args += [wlin, blin, h0p, c0p]

    kernel = _make_fused_kernel(L, S, Bp, H)
    out_pad, hn_p, cn_p = pl.pallas_call(
        kernel,
        out_shape=(jax.ShapeDtypeStruct((S * Bp, Opad), jnp.float32),
                   jax.ShapeDtypeStruct((L, Bp, H), jnp.float32),
                   jax.ShapeDtypeStruct((L, Bp, H), jnp.float32)),
        in_specs=[pl.BlockSpec(memory_space=pltpu.MemorySpace.VMEM)] * len(args),
        out_specs=(pl.BlockSpec(memory_space=pltpu.MemorySpace.VMEM),
                   pl.BlockSpec(memory_space=pltpu.MemorySpace.VMEM),
                   pl.BlockSpec(memory_space=pltpu.MemorySpace.VMEM)),
        scratch_shapes=[pltpu.VMEM((S * Bp, 4 * H), jnp.float32),   # g0_sc
                        pltpu.VMEM((S * Bp, H), jnp.float32)],      # y_sc
    )(*args)

    linear_out = jnp.transpose(
        out_pad.reshape(S, Bp, Opad)[:, :B, :output_size], (1, 0, 2))
    return linear_out, (hn_p[:, :B, :], cn_p[:, :B, :])


# ---------------------------------------------------------------------------
# Deterministic parameter init (mirrors torch.nn.LSTM / Linear shapes)
# ---------------------------------------------------------------------------
def init_params(key, input_size, hidden_size, num_layers, output_size):
    k = 1.0 / jnp.sqrt(hidden_size)
    params = {"lstm": [], "linear": {}}
    keys = jax.random.split(key, num_layers * 4 + 2)
    idx = 0
    for l in range(num_layers):
        d_in = input_size if l == 0 else hidden_size
        params["lstm"].append({
            "w_ih": jax.random.uniform(keys[idx + 0], (4 * hidden_size, d_in),
                                       jnp.float32, -k, k),
            "w_hh": jax.random.uniform(keys[idx + 1], (4 * hidden_size, hidden_size),
                                       jnp.float32, -k, k),
            "b_ih": jax.random.uniform(keys[idx + 2], (4 * hidden_size,),
                                       jnp.float32, -k, k),
            "b_hh": jax.random.uniform(keys[idx + 3], (4 * hidden_size,),
                                       jnp.float32, -k, k),
        })
        idx += 4
    params["linear"]["w"] = jax.random.uniform(keys[idx], (output_size, hidden_size),
                                               jnp.float32, -k, k)
    params["linear"]["b"] = jax.random.uniform(keys[idx + 1], (output_size,),
                                               jnp.float32, -k, k)
    return params


# Pure-JAX reference (torch-style math) for a correctness sanity check.
def _reference_forward(x, params, h0, c0):
    B, S, _ = x.shape
    H = params["lstm"][0]["w_hh"].shape[1]
    layer_in = x
    h_finals, c_finals = [], []
    for l, p in enumerate(params["lstm"]):
        h, c = h0[l], c0[l]
        outs = []
        for t in range(S):
            g = (layer_in[:, t, :] @ p["w_ih"].T + h @ p["w_hh"].T
                 + p["b_ih"] + p["b_hh"])
            i = jax.nn.sigmoid(g[:, 0:H]); f = jax.nn.sigmoid(g[:, H:2*H])
            gg = jnp.tanh(g[:, 2*H:3*H]); o = jax.nn.sigmoid(g[:, 3*H:4*H])
            c = f * c + i * gg
            h = o * jnp.tanh(c)
            outs.append(h)
        layer_in = jnp.stack(outs, axis=1)
        h_finals.append(h); c_finals.append(c)
    lin = layer_in @ params["linear"]["w"].T + params["linear"]["b"]
    return lin, (jnp.stack(h_finals), jnp.stack(c_finals))


if __name__ == "__main__":
    # config: input_size=8, hidden_size=32, lstm_layers=2, output_size=4, dropout=0.0
    B, S, IN, HID, LAYERS, OUT = 2, 8, 8, 32, 2, 4

    key = jax.random.PRNGKey(0)
    kx, kp = jax.random.split(key)
    x = jax.random.normal(kx, (B, S, IN), dtype=jnp.float32)
    params = init_params(kp, IN, HID, LAYERS, OUT)

    # hidden=None -> zero initial state, shape (num_layers, batch, hidden)
    h0 = jnp.zeros((LAYERS, B, HID), jnp.float32)
    c0 = jnp.zeros((LAYERS, B, HID), jnp.float32)

    # One-time weight prep (outside the per-call jitted forward).
    lstm_p, wlin, blin, O = prepare_params(params)

    linear_out, (h_n, c_n) = network_forward(x, lstm_p, wlin, blin, h0, c0,
                                             output_size=O)
    jax.block_until_ready(linear_out)
    jax.block_until_ready(h_n)
    jax.block_until_ready(c_n)

    ref_out, (ref_h, ref_c) = _reference_forward(x, params, h0, c0)
    assert linear_out.shape == (B, S, OUT)
    assert h_n.shape == (LAYERS, B, HID) and c_n.shape == (LAYERS, B, HID)
    assert jnp.allclose(linear_out, ref_out, atol=1e-5, rtol=1e-5)
    assert jnp.allclose(h_n, ref_h, atol=1e-5, rtol=1e-5)
    assert jnp.allclose(c_n, ref_c, atol=1e-5, rtol=1e-5)

    print("KERNEL_OK")
</pallas_src>

<mosaic_0001>
module attributes {stable_mosaic.version = 11 : i64} {
  func.func @kernel(%arg0: memref<64x8xf32, #tpu.memory_space<vmem>>, %arg1: memref<8x128xf32, #tpu.memory_space<vmem>>, %arg2: memref<32x128xf32, #tpu.memory_space<vmem>>, %arg3: memref<1x128xf32, #tpu.memory_space<vmem>>, %arg4: memref<32x128xf32, #tpu.memory_space<vmem>>, %arg5: memref<32x128xf32, #tpu.memory_space<vmem>>, %arg6: memref<1x128xf32, #tpu.memory_space<vmem>>, %arg7: memref<32x128xf32, #tpu.memory_space<vmem>>, %arg8: memref<1x128xf32, #tpu.memory_space<vmem>>, %arg9: memref<2x8x32xf32, #tpu.memory_space<vmem>>, %arg10: memref<2x8x32xf32, #tpu.memory_space<vmem>>, %arg11: memref<64x128xf32, #tpu.memory_space<vmem>>, %arg12: memref<2x8x32xf32, #tpu.memory_space<vmem>>, %arg13: memref<2x8x32xf32, #tpu.memory_space<vmem>>, %arg14: memref<64x128xf32, #tpu.memory_space<vmem>>, %arg15: memref<64x32xf32, #tpu.memory_space<vmem>>) attributes {dimension_semantics = [], scalar_prefetch = 0 : i64, scratch_operands = 2 : i64, tpu.core_type = #tpu.core_type<tc>} {
    %c0 = arith.constant 0 : index
    %c0_0 = arith.constant 0 : index
    %0 = vector.load %arg0[%c0, %c0_0] : memref<64x8xf32, #tpu.memory_space<vmem>>, vector<64x8xf32>
    %c0_1 = arith.constant 0 : index
    %c0_2 = arith.constant 0 : index
    %1 = vector.load %arg1[%c0_1, %c0_2] : memref<8x128xf32, #tpu.memory_space<vmem>>, vector<8x128xf32>
    %cst = arith.constant dense<0.000000e+00> : vector<64x128xf32>
    %2 = tpu.matmul %0, %1, %cst {dimension_numbers = #tpu.dot_dimension_numbers<[1], [0], [0], [1], [0, 0, 1, 1], [], []>} : vector<64x8xf32>, vector<8x128xf32>, vector<64x128xf32> -> vector<64x128xf32>
    %c0_3 = arith.constant 0 : index
    %c0_4 = arith.constant 0 : index
    %3 = vector.load %arg3[%c0_3, %c0_4] : memref<1x128xf32, #tpu.memory_space<vmem>>, vector<1x128xf32>
    %4 = vector.broadcast %3 : vector<1x128xf32> to vector<64x128xf32>
    %5 = arith.addf %2, %4 : vector<64x128xf32>
    %c0_5 = arith.constant 0 : index
    %c0_6 = arith.constant 0 : index
    %6 = vector.load %arg14[%c0_5, %c0_6] : memref<64x128xf32, #tpu.memory_space<vmem>>, vector<64x128xf32>
    tpu.vector_store %arg14[%c0_5, %c0_6], %5 {strides = array<i32>} : memref<64x128xf32, #tpu.memory_space<vmem>>, vector<64x128xf32>,
    %c0_7 = arith.constant 0 : index
    %c0_8 = arith.constant 0 : index
    %7 = vector.load %arg2[%c0_7, %c0_8] : memref<32x128xf32, #tpu.memory_space<vmem>>, vector<32x128xf32>
    %c0_9 = arith.constant 0 : index
    %c0_10 = arith.constant 0 : index
    %8 = vector.load %arg5[%c0_9, %c0_10] : memref<32x128xf32, #tpu.memory_space<vmem>>, vector<32x128xf32>
    %c0_11 = arith.constant 0 : index
    %c0_12 = arith.constant 0 : index
    %9 = vector.load %arg4[%c0_11, %c0_12] : memref<32x128xf32, #tpu.memory_space<vmem>>, vector<32x128xf32>
    %c0_13 = arith.constant 0 : index
    %c0_14 = arith.constant 0 : index
    %10 = vector.load %arg6[%c0_13, %c0_14] : memref<1x128xf32, #tpu.memory_space<vmem>>, vector<1x128xf32>
    %c0_15 = arith.constant 0 : index
    %c0_16 = arith.constant 0 : index
    %c0_17 = arith.constant 0 : index
    %11 = vector.load %arg9[%c0_15, %c0_16, %c0_17] : memref<2x8x32xf32, #tpu.memory_space<vmem>>, vector<1x8x32xf32>
    %12 = vector.shape_cast %11 : vector<1x8x32xf32> to vector<8x32xf32>
    %c1 = arith.constant 1 : index
    %c0_18 = arith.constant 0 : index
    %c0_19 = arith.constant 0 : index
    %13 = vector.load %arg9[%c1, %c0_18, %c0_19] : memref<2x8x32xf32, #tpu.memory_space<vmem>>, vector<1x8x32xf32>
    %14 = vector.shape_cast %13 : vector<1x8x32xf32> to vector<8x32xf32>
    %c0_20 = arith.constant 0 : index
    %c0_21 = arith.constant 0 : index
    %c0_22 = arith.constant 0 : index
    %15 = vector.load %arg10[%c0_20, %c0_21, %c0_22] : memref<2x8x32xf32, #tpu.memory_space<vmem>>, vector<1x8x32xf32>
    %16 = vector.shape_cast %15 : vector<1x8x32xf32> to vector<8x32xf32>
    %c1_23 = arith.constant 1 : index
    %c0_24 = arith.constant 0 : index
    %c0_25 = arith.constant 0 : index
    %17 = vector.load %arg10[%c1_23, %c0_24, %c0_25] : memref<2x8x32xf32, #tpu.memory_space<vmem>>, vector<1x8x32xf32>
    %18 = vector.shape_cast %17 : vector<1x8x32xf32> to vector<8x32xf32>
    %c0_26 = arith.constant 0 : index
    %c0_27 = arith.constant 0 : index
    %19 = vector.load %arg14[%c0_26, %c0_27] : memref<64x128xf32, #tpu.memory_space<vmem>>, vector<8x128xf32>
    %cst_28 = arith.constant dense<0.000000e+00> : vector<8x128xf32>
    %20 = tpu.matmul %12, %7, %cst_28 {dimension_numbers = #tpu.dot_dimension_numbers<[1], [0], [0], [1], [0, 0, 1, 1], [], []>} : vector<8x32xf32>, vector<32x128xf32>, vector<8x128xf32> -> vector<8x128xf32>
    %21 = arith.addf %19, %20 : vector<8x128xf32>
    %22 = math.tanh %21 : vector<8x128xf32>
    %cst_29 = arith.constant 5.000000e-01 : f32
    %23 = vector.broadcast %cst_29 : f32 to vector<8x128xf32>
    %24 = arith.mulf %23, %22 : vector<8x128xf32>
    %cst_30 = arith.constant 5.000000e-01 : f32
    %25 = vector.broadcast %cst_30 : f32 to vector<8x128xf32>
    %26 = arith.addf %24, %25 : vector<8x128xf32>
    %27 = vector.extract_strided_slice %26 {offsets = [0, 32], sizes = [8, 32], strides = [1, 1]} : vector<8x128xf32> to vector<8x32xf32>
    %28 = arith.mulf %27, %16 : vector<8x32xf32>
    %29 = vector.extract_strided_slice %26 {offsets = [0, 0], sizes = [8, 32], strides = [1, 1]} : vector<8x128xf32> to vector<8x32xf32>
    %30 = vector.extract_strided_slice %22 {offsets = [0, 64], sizes = [8, 32], strides = [1, 1]} : vector<8x128xf32> to vector<8x32xf32>
    %31 = arith.mulf %29, %30 : vector<8x32xf32>
    %32 = arith.addf %28, %31 : vector<8x32xf32>
    %33 = vector.extract_strided_slice %26 {offsets = [0, 96], sizes = [8, 32], strides = [1, 1]} : vector<8x128xf32> to vector<8x32xf32>
    %34 = math.tanh %32 : vector<8x32xf32>
    %35 = arith.mulf %33, %34 : vector<8x32xf32>
    %cst_31 = arith.constant dense<0.000000e+00> : vector<8x128xf32>
    %36 = tpu.matmul %35, %9, %cst_31 {dimension_numbers = #tpu.dot_dimension_numbers<[1], [0], [0], [1], [0, 0, 1, 1], [], []>} : vector<8x32xf32>, vector<32x128xf32>, vector<8x128xf32> -> vector<8x128xf32>
    %37 = vector.broadcast %10 : vector<1x128xf32> to vector<8x128xf32>
    %38 = arith.addf %36, %37 : vector<8x128xf32>
    %cst_32 = arith.constant dense<0.000000e+00> : vector<8x128xf32>
    %39 = tpu.matmul %14, %8, %cst_32 {dimension_numbers = #tpu.dot_dimension_numbers<[1], [0], [0], [1], [0, 0, 1, 1], [], []>} : vector<8x32xf32>, vector<32x128xf32>, vector<8x128xf32> -> vector<8x128xf32>
    %40 = arith.addf %38, %39 : vector<8x128xf32>
    %41 = math.tanh %40 : vector<8x128xf32>
    %cst_33 = arith.constant 5.000000e-01 : f32
    %42 = vector.broadcast %cst_33 : f32 to vector<8x128xf32>
    %43 = arith.mulf %42, %41 : vector<8x128xf32>
    %cst_34 = arith.constant 5.000000e-01 : f32
    %44 = vector.broadcast %cst_34 : f32 to vector<8x128xf32>
    %45 = arith.addf %43, %44 : vector<8x128xf32>
    %46 = vector.extract_strided_slice %45 {offsets = [0, 32], sizes = [8, 32], strides = [1, 1]} : vector<8x128xf32> to vector<8x32xf32>
    %47 = arith.mulf %46, %18 : vector<8x32xf32>
    %48 = vector.extract_strided_slice %45 {offsets = [0, 0], sizes = [8, 32], strides = [1, 1]} : vector<8x128xf32> to vector<8x32xf32>
    %49 = vector.extract_strided_slice %41 {offsets = [0, 64], sizes = [8, 32], strides = [1, 1]} : vector<8x128xf32> to vector<8x32xf32>
    %50 = arith.mulf %48, %49 : vector<8x32xf32>
    %51 = arith.addf %47, %50 : vector<8x32xf32>
    %52 = vector.extract_strided_slice %45 {offsets = [0, 96], sizes = [8, 32], strides = [1, 1]} : vector<8x128xf32> to vector<8x32xf32>
    %53 = math.tanh %51 : vector<8x32xf32>
    %54 = arith.mulf %52, %53 : vector<8x32xf32>
    %c0_35 = arith.constant 0 : index
    %c0_36 = arith.constant 0 : index
    %55 = vector.load %arg15[%c0_35, %c0_36] : memref<64x32xf32, #tpu.memory_space<vmem>>, vector<8x32xf32>
    tpu.vector_store %arg15[%c0_35, %c0_36], %54 {strides = array<i32>} : memref<64x32xf32, #tpu.memory_space<vmem>>, vector<8x32xf32>,
    %c8 = arith.constant 8 : index
    %c0_37 = arith.constant 0 : index
    %56 = vector.load %arg14[%c8, %c0_37] : memref<64x128xf32, #tpu.memory_space<vmem>>, vector<8x128xf32>
    %cst_38 = arith.constant dense<0.000000e+00> : vector<8x128xf32>
    %57 = tpu.matmul %35, %7, %cst_38 {dimension_numbers = #tpu.dot_dimension_numbers<[1], [0], [0], [1], [0, 0, 1, 1], [], []>} : vector<8x32xf32>, vector<32x128xf32>, vector<8x128xf32> -> vector<8x128xf32>
    %58 = arith.addf %56, %57 : vector<8x128xf32>
    %59 = math.tanh %58 : vector<8x128xf32>
    %cst_39 = arith.constant 5.000000e-01 : f32
    %60 = vector.broadcast %cst_39 : f32 to vector<8x128xf32>
    %61 = arith.mulf %60, %59 : vector<8x128xf32>
    %cst_40 = arith.constant 5.000000e-01 : f32
    %62 = vector.broadcast %cst_40 : f32 to vector<8x128xf32>
    %63 = arith.addf %61, %62 : vector<8x128xf32>
    %64 = vector.extract_strided_slice %63 {offsets = [0, 32], sizes = [8, 32], strides = [1, 1]} : vector<8x128xf32> to vector<8x32xf32>
    %65 = arith.mulf %64, %32 : vector<8x32xf32>
    %66 = vector.extract_strided_slice %63 {offsets = [0, 0], sizes = [8, 32], strides = [1, 1]} : vector<8x128xf32> to vector<8x32xf32>
    %67 = vector.extract_strided_slice %59 {offsets = [0, 64], sizes = [8, 32], strides = [1, 1]} : vector<8x128xf32> to vector<8x32xf32>
    %68 = arith.mulf %66, %67 : vector<8x32xf32>
    %69 = arith.addf %65, %68 : vector<8x32xf32>
    %70 = vector.extract_strided_slice %63 {offsets = [0, 96], sizes = [8, 32], strides = [1, 1]} : vector<8x128xf32> to vector<8x32xf32>
    %71 = math.tanh %69 : vector<8x32xf32>
    %72 = arith.mulf %70, %71 : vector<8x32xf32>
    %cst_41 = arith.constant dense<0.000000e+00> : vector<8x128xf32>
    %73 = tpu.matmul %72, %9, %cst_41 {dimension_numbers = #tpu.dot_dimension_numbers<[1], [0], [0], [1], [0, 0, 1, 1], [], []>} : vector<8x32xf32>, vector<32x128xf32>, vector<8x128xf32> -> vector<8x128xf32>
    %74 = vector.broadcast %10 : vector<1x128xf32> to vector<8x128xf32>
    %75 = arith.addf %73, %74 : vector<8x128xf32>
    %cst_42 = arith.constant dense<0.000000e+00> : vector<8x128xf32>
    %76 = tpu.matmul %54, %8, %cst_42 {dimension_numbers = #tpu.dot_dimension_numbers<[1], [0], [0], [1], [0, 0, 1, 1], [], []>} : vector<8x32xf32>, vector<32x128xf32>, vector<8x128xf32> -> vector<8x128xf32>
    %77 = arith.addf %75, %76 : vector<8x128xf32>
    %78 = math.tanh %77 : vector<8x128xf32>
    %cst_43 = arith.constant 5.000000e-01 : f32
    %79 = vector.broadcast %cst_43 : f32 to vector<8x128xf32>
    %80 = arith.mulf %79, %78 : vector<8x128xf32>
    %cst_44 = arith.constant 5.000000e-01 : f32
    %81 = vector.broadcast %cst_44 : f32 to vector<8x128xf32>
    %82 = arith.addf %80, %81 : vector<8x128xf32>
    %83 = vector.extract_strided_slice %82 {offsets = [0, 32], sizes = [8, 32], strides = [1, 1]} : vector<8x128xf32> to vector<8x32xf32>
    %84 = arith.mulf %83, %51 : vector<8x32xf32>
    %85 = vector.extract_strided_slice %82 {offsets = [0, 0], sizes = [8, 32], strides = [1, 1]} : vector<8x128xf32> to vector<8x32xf32>
    %86 = vector.extract_strided_slice %78 {offsets = [0, 64], sizes = [8, 32], strides = [1, 1]} : vector<8x128xf32> to vector<8x32xf32>
    %87 = arith.mulf %85, %86 : vector<8x32xf32>
    %88 = arith.addf %84, %87 : vector<8x32xf32>
    %89 = vector.extract_strided_slice %82 {offsets = [0, 96], sizes = [8, 32], strides = [1, 1]} : vector<8x128xf32> to vector<8x32xf32>
    %90 = math.tanh %88 : vector<8x32xf32>
    %91 = arith.mulf %89, %90 : vector<8x32xf32>
    %c8_45 = arith.constant 8 : index
    %c0_46 = arith.constant 0 : index
    %92 = vector.load %arg15[%c8_45, %c0_46] : memref<64x32xf32, #tpu.memory_space<vmem>>, vector<8x32xf32>
    tpu.vector_store %arg15[%c8_45, %c0_46], %91 {strides = array<i32>} : memref<64x32xf32, #tpu.memory_space<vmem>>, vector<8x32xf32>,
    %c16 = arith.constant 16 : index
    %c0_47 = arith.constant 0 : index
    %93 = vector.load %arg14[%c16, %c0_47] : memref<64x128xf32, #tpu.memory_space<vmem>>, vector<8x128xf32>
    %cst_48 = arith.constant dense<0.000000e+00> : vector<8x128xf32>
    %94 = tpu.matmul %72, %7, %cst_48 {dimension_numbers = #tpu.dot_dimension_numbers<[1], [0], [0], [1], [0, 0, 1, 1], [], []>} : vector<8x32xf32>, vector<32x128xf32>, vector<8x128xf32> -> vector<8x128xf32>
    %95 = arith.addf %93, %94 : vector<8x128xf32>
    %96 = math.tanh %95 : vector<8x128xf32>
    %cst_49 = arith.constant 5.000000e-01 : f32
    %97 = vector.broadcast %cst_49 : f32 to vector<8x128xf32>
    %98 = arith.mulf %97, %96 : vector<8x128xf32>
    %cst_50 = arith.constant 5.000000e-01 : f32
    %99 = vector.broadcast %cst_50 : f32 to vector<8x128xf32>
    %100 = arith.addf %98, %99 : vector<8x128xf32>
    %101 = vector.extract_strided_slice %100 {offsets = [0, 32], sizes = [8, 32], strides = [1, 1]} : vector<8x128xf32> to vector<8x32xf32>
    %102 = arith.mulf %101, %69 : vector<8x32xf32>
    %103 = vector.extract_strided_slice %100 {offsets = [0, 0], sizes = [8, 32], strides = [1, 1]} : vector<8x128xf32> to vector<8x32xf32>
    %104 = vector.extract_strided_slice %96 {offsets = [0, 64], sizes = [8, 32], strides = [1, 1]} : vector<8x128xf32> to vector<8x32xf32>
    %105 = arith.mulf %103, %104 : vector<8x32xf32>
    %106 = arith.addf %102, %105 : vector<8x32xf32>
    %107 = vector.extract_strided_slice %100 {offsets = [0, 96], sizes = [8, 32], strides = [1, 1]} : vector<8x128xf32> to vector<8x32xf32>
    %108 = math.tanh %106 : vector<8x32xf32>
    %109 = arith.mulf %107, %108 : vector<8x32xf32>
    %cst_51 = arith.constant dense<0.000000e+00> : vector<8x128xf32>
    %110 = tpu.matmul %109, %9, %cst_51 {dimension_numbers = #tpu.dot_dimension_numbers<[1], [0], [0], [1], [0, 0, 1, 1], [], []>} : vector<8x32xf32>, vector<32x128xf32>, vector<8x128xf32> -> vector<8x128xf32>
    %111 = vector.broadcast %10 : vector<1x128xf32> to vector<8x128xf32>
    %112 = arith.addf %110, %111 : vector<8x128xf32>
    %cst_52 = arith.constant dense<0.000000e+00> : vector<8x128xf32>
    %113 = tpu.matmul %91, %8, %cst_52 {dimension_numbers = #tpu.dot_dimension_numbers<[1], [0], [0], [1], [0, 0, 1, 1], [], []>} : vector<8x32xf32>, vector<32x128xf32>, vector<8x128xf32> -> vector<8x128xf32>
    %114 = arith.addf %112, %113 : vector<8x128xf32>
    %115 = math.tanh %114 : vector<8x128xf32>
    %cst_53 = arith.constant 5.000000e-01 : f32
    %116 = vector.broadcast %cst_53 : f32 to vector<8x128xf32>
    %117 = arith.mulf %116, %115 : vector<8x128xf32>
    %cst_54 = arith.constant 5.000000e-01 : f32
    %118 = vector.broadcast %cst_54 : f32 to vector<8x128xf32>
    %119 = arith.addf %117, %118 : vector<8x128xf32>
    %120 = vector.extract_strided_slice %119 {offsets = [0, 32], sizes = [8, 32], strides = [1, 1]} : vector<8x128xf32> to vector<8x32xf32>
    %121 = arith.mulf %120, %88 : vector<8x32xf32>
    %122 = vector.extract_strided_slice %119 {offsets = [0, 0], sizes = [8, 32], strides = [1, 1]} : vector<8x128xf32> to vector<8x32xf32>
    %123 = vector.extract_strided_slice %115 {offsets = [0, 64], sizes = [8, 32], strides = [1, 1]} : vector<8x128xf32> to vector<8x32xf32>
    %124 = arith.mulf %122, %123 : vector<8x32xf32>
    %125 = arith.addf %121, %124 : vector<8x32xf32>
    %126 = vector.extract_strided_slice %119 {offsets = [0, 96], sizes = [8, 32], strides = [1, 1]} : vector<8x128xf32> to vector<8x32xf32>
    %127 = math.tanh %125 : vector<8x32xf32>
    %128 = arith.mulf %126, %127 : vector<8x32xf32>
    %c16_55 = arith.constant 16 : index
    %c0_56 = arith.constant 0 : index
    %129 = vector.load %arg15[%c16_55, %c0_56] : memref<64x32xf32, #tpu.memory_space<vmem>>, vector<8x32xf32>
    tpu.vector_store %arg15[%c16_55, %c0_56], %128 {strides = array<i32>} : memref<64x32xf32, #tpu.memory_space<vmem>>, vector<8x32xf32>,
    %c24 = arith.constant 24 : index
    %c0_57 = arith.constant 0 : index
    %130 = vector.load %arg14[%c24, %c0_57] : memref<64x128xf32, #tpu.memory_space<vmem>>, vector<8x128xf32>
    %cst_58 = arith.constant dense<0.000000e+00> : vector<8x128xf32>
    %131 = tpu.matmul %109, %7, %cst_58 {dimension_numbers = #tpu.dot_dimension_numbers<[1], [0], [0], [1], [0, 0, 1, 1], [], []>} : vector<8x32xf32>, vector<32x128xf32>, vector<8x128xf32> -> vector<8x128xf32>
    %132 = arith.addf %130, %131 : vector<8x128xf32>
    %133 = math.tanh %132 : vector<8x128xf32>
    %cst_59 = arith.constant 5.000000e-01 : f32
    %134 = vector.broadcast %cst_59 : f32 to vector<8x128xf32>
    %135 = arith.mulf %134, %133 : vector<8x128xf32>
    %cst_60 = arith.constant 5.000000e-01 : f32
    %136 = vector.broadcast %cst_60 : f32 to vector<8x128xf32>
    %137 = arith.addf %135, %136 : vector<8x128xf32>
    %138 = vector.extract_strided_slice %137 {offsets = [0, 32], sizes = [8, 32], strides = [1, 1]} : vector<8x128xf32> to vector<8x32xf32>
    %139 = arith.mulf %138, %106 : vector<8x32xf32>
    %140 = vector.extract_strided_slice %137 {offsets = [0, 0], sizes = [8, 32], strides = [1, 1]} : vector<8x128xf32> to vector<8x32xf32>
    %141 = vector.extract_strided_slice %133 {offsets = [0, 64], sizes = [8, 32], strides = [1, 1]} : vector<8x128xf32> to vector<8x32xf32>
    %142 = arith.mulf %140, %141 : vector<8x32xf32>
    %143 = arith.addf %139, %142 : vector<8x32xf32>
    %144 = vector.extract_strided_slice %137 {offsets = [0, 96], sizes = [8, 32], strides = [1, 1]} : vector<8x128xf32> to vector<8x32xf32>
    %145 = math.tanh %143 : vector<8x32xf32>
    %146 = arith.mulf %144, %145 : vector<8x32xf32>
    %cst_61 = arith.constant dense<0.000000e+00> : vector<8x128xf32>
    %147 = tpu.matmul %146, %9, %cst_61 {dimension_numbers = #tpu.dot_dimension_numbers<[1], [0], [0], [1], [0, 0, 1, 1], [], []>} : vector<8x32xf32>, vector<32x128xf32>, vector<8x128xf32> -> vector<8x128xf32>
    %148 = vector.broadcast %10 : vector<1x128xf32> to vector<8x128xf32>
    %149 = arith.addf %147, %148 : vector<8x128xf32>
    %cst_62 = arith.constant dense<0.000000e+00> : vector<8x128xf32>
    %150 = tpu.matmul %128, %8, %cst_62 {dimension_numbers = #tpu.dot_dimension_numbers<[1], [0], [0], [1], [0, 0, 1, 1], [], []>} : vector<8x32xf32>, vector<32x128xf32>, vector<8x128xf32> -> vector<8x128xf32>
    %151 = arith.addf %149, %150 : vector<8x128xf32>
    %152 = math.tanh %151 : vector<8x128xf32>
    %cst_63 = arith.constant 5.000000e-01 : f32
    %153 = vector.broadcast %cst_63 : f32 to vector<8x128xf32>
    %154 = arith.mulf %153, %152 : vector<8x128xf32>
    %cst_64 = arith.constant 5.000000e-01 : f32
    %155 = vector.broadcast %cst_64 : f32 to vector<8x128xf32>
    %156 = arith.addf %154, %155 : vector<8x128xf32>
    %157 = vector.extract_strided_slice %156 {offsets = [0, 32], sizes = [8, 32], strides = [1, 1]} : vector<8x128xf32> to vector<8x32xf32>
    %158 = arith.mulf %157, %125 : vector<8x32xf32>
    %159 = vector.extract_strided_slice %156 {offsets = [0, 0], sizes = [8, 32], strides = [1, 1]} : vector<8x128xf32> to vector<8x32xf32>
    %160 = vector.extract_strided_slice %152 {offsets = [0, 64], sizes = [8, 32], strides = [1, 1]} : vector<8x128xf32> to vector<8x32xf32>
    %161 = arith.mulf %159, %160 : vector<8x32xf32>
    %162 = arith.addf %158, %161 : vector<8x32xf32>
    %163 = vector.extract_strided_slice %156 {offsets = [0, 96], sizes = [8, 32], strides = [1, 1]} : vector<8x128xf32> to vector<8x32xf32>
    %164 = math.tanh %162 : vector<8x32xf32>
    %165 = arith.mulf %163, %164 : vector<8x32xf32>
    %c24_65 = arith.constant 24 : index
    %c0_66 = arith.constant 0 : index
    %166 = vector.load %arg15[%c24_65, %c0_66] : memref<64x32xf32, #tpu.memory_space<vmem>>, vector<8x32xf32>
    tpu.vector_store %arg15[%c24_65, %c0_66], %165 {strides = array<i32>} : memref<64x32xf32, #tpu.memory_space<vmem>>, vector<8x32xf32>,
    %c32 = arith.constant 32 : index
    %c0_67 = arith.constant 0 : index
    %167 = vector.load %arg14[%c32, %c0_67] : memref<64x128xf32, #tpu.memory_space<vmem>>, vector<8x128xf32>
    %cst_68 = arith.constant dense<0.000000e+00> : vector<8x128xf32>
    %168 = tpu.matmul %146, %7, %cst_68 {dimension_numbers = #tpu.dot_dimension_numbers<[1], [0], [0], [1], [0, 0, 1, 1], [], []>} : vector<8x32xf32>, vector<32x128xf32>, vector<8x128xf32> -> vector<8x128xf32>
    %169 = arith.addf %167, %168 : vector<8x128xf32>
    %170 = math.tanh %169 : vector<8x128xf32>
    %cst_69 = arith.constant 5.000000e-01 : f32
    %171 = vector.broadcast %cst_69 : f32 to vector<8x128xf32>
    %172 = arith.mulf %171, %170 : vector<8x128xf32>
    %cst_70 = arith.constant 5.000000e-01 : f32
    %173 = vector.broadcast %cst_70 : f32 to vector<8x128xf32>
    %174 = arith.addf %172, %173 : vector<8x128xf32>
    %175 = vector.extract_strided_slice %174 {offsets = [0, 32], sizes = [8, 32], strides = [1, 1]} : vector<8x128xf32> to vector<8x32xf32>
    %176 = arith.mulf %175, %143 : vector<8x32xf32>
    %177 = vector.extract_strided_slice %174 {offsets = [0, 0], sizes = [8, 32], strides = [1, 1]} : vector<8x128xf32> to vector<8x32xf32>
    %178 = vector.extract_strided_slice %170 {offsets = [0, 64], sizes = [8, 32], strides = [1, 1]} : vector<8x128xf32> to vector<8x32xf32>
    %179 = arith.mulf %177, %178 : vector<8x32xf32>
    %180 = arith.addf %176, %179 : vector<8x32xf32>
    %181 = vector.extract_strided_slice %174 {offsets = [0, 96], sizes = [8, 32], strides = [1, 1]} : vector<8x128xf32> to vector<8x32xf32>
    %182 = math.tanh %180 : vector<8x32xf32>
    %183 = arith.mulf %181, %182 : vector<8x32xf32>
    %cst_71 = arith.constant dense<0.000000e+00> : vector<8x128xf32>
    %184 = tpu.matmul %183, %9, %cst_71 {dimension_numbers = #tpu.dot_dimension_numbers<[1], [0], [0], [1], [0, 0, 1, 1], [], []>} : vector<8x32xf32>, vector<32x128xf32>, vector<8x128xf32> -> vector<8x128xf32>
    %185 = vector.broadcast %10 : vector<1x128xf32> to vector<8x128xf32>
    %186 = arith.addf %184, %185 : vector<8x128xf32>
    %cst_72 = arith.constant dense<0.000000e+00> : vector<8x128xf32>
    %187 = tpu.matmul %165, %8, %cst_72 {dimension_numbers = #tpu.dot_dimension_numbers<[1], [0], [0], [1], [0, 0, 1, 1], [], []>} : vector<8x32xf32>, vector<32x128xf32>, vector<8x128xf32> -> vector<8x128xf32>
    %188 = arith.addf %186, %187 : vector<8x128xf32>
    %189 = math.tanh %188 : vector<8x128xf32>
    %cst_73 = arith.constant 5.000000e-01 : f32
    %190 = vector.broadcast %cst_73 : f32 to vector<8x128xf32>
    %191 = arith.mulf %190, %189 : vector<8x128xf32>
    %cst_74 = arith.constant 5.000000e-01 : f32
    %192 = vector.broadcast %cst_74 : f32 to vector<8x128xf32>
    %193 = arith.addf %191, %192 : vector<8x128xf32>
    %194 = vector.extract_strided_slice %193 {offsets = [0, 32], sizes = [8, 32], strides = [1, 1]} : vector<8x128xf32> to vector<8x32xf32>
    %195 = arith.mulf %194, %162 : vector<8x32xf32>
    %196 = vector.extract_strided_slice %193 {offsets = [0, 0], sizes = [8, 32], strides = [1, 1]} : vector<8x128xf32> to vector<8x32xf32>
    %197 = vector.extract_strided_slice %189 {offsets = [0, 64], sizes = [8, 32], strides = [1, 1]} : vector<8x128xf32> to vector<8x32xf32>
    %198 = arith.mulf %196, %197 : vector<8x32xf32>
    %199 = arith.addf %195, %198 : vector<8x32xf32>
    %200 = vector.extract_strided_slice %193 {offsets = [0, 96], sizes = [8, 32], strides = [1, 1]} : vector<8x128xf32> to vector<8x32xf32>
    %201 = math.tanh %199 : vector<8x32xf32>
    %202 = arith.mulf %200, %201 : vector<8x32xf32>
    %c32_75 = arith.constant 32 : index
    %c0_76 = arith.constant 0 : index
    %203 = vector.load %arg15[%c32_75, %c0_76] : memref<64x32xf32, #tpu.memory_space<vmem>>, vector<8x32xf32>
    tpu.vector_store %arg15[%c32_75, %c0_76], %202 {strides = array<i32>} : memref<64x32xf32, #tpu.memory_space<vmem>>, vector<8x32xf32>,
    %c40 = arith.constant 40 : index
    %c0_77 = arith.constant 0 : index
    %204 = vector.load %arg14[%c40, %c0_77] : memref<64x128xf32, #tpu.memory_space<vmem>>, vector<8x128xf32>
    %cst_78 = arith.constant dense<0.000000e+00> : vector<8x128xf32>
    %205 = tpu.matmul %183, %7, %cst_78 {dimension_numbers = #tpu.dot_dimension_numbers<[1], [0], [0], [1], [0, 0, 1, 1], [], []>} : vector<8x32xf32>, vector<32x128xf32>, vector<8x128xf32> -> vector<8x128xf32>
    %206 = arith.addf %204, %205 : vector<8x128xf32>
    %207 = math.tanh %206 : vector<8x128xf32>
    %cst_79 = arith.constant 5.000000e-01 : f32
    %208 = vector.broadcast %cst_79 : f32 to vector<8x128xf32>
    %209 = arith.mulf %208, %207 : vector<8x128xf32>
    %cst_80 = arith.constant 5.000000e-01 : f32
    %210 = vector.broadcast %cst_80 : f32 to vector<8x128xf32>
    %211 = arith.addf %209, %210 : vector<8x128xf32>
    %212 = vector.extract_strided_slice %211 {offsets = [0, 32], sizes = [8, 32], strides = [1, 1]} : vector<8x128xf32> to vector<8x32xf32>
    %213 = arith.mulf %212, %180 : vector<8x32xf32>
    %214 = vector.extract_strided_slice %211 {offsets = [0, 0], sizes = [8, 32], strides = [1, 1]} : vector<8x128xf32> to vector<8x32xf32>
    %215 = vector.extract_strided_slice %207 {offsets = [0, 64], sizes = [8, 32], strides = [1, 1]} : vector<8x128xf32> to vector<8x32xf32>
    %216 = arith.mulf %214, %215 : vector<8x32xf32>
    %217 = arith.addf %213, %216 : vector<8x32xf32>
    %218 = vector.extract_strided_slice %211 {offsets = [0, 96], sizes = [8, 32], strides = [1, 1]} : vector<8x128xf32> to vector<8x32xf32>
    %219 = math.tanh %217 : vector<8x32xf32>
    %220 = arith.mulf %218, %219 : vector<8x32xf32>
    %cst_81 = arith.constant dense<0.000000e+00> : vector<8x128xf32>
    %221 = tpu.matmul %220, %9, %cst_81 {dimension_numbers = #tpu.dot_dimension_numbers<[1], [0], [0], [1], [0, 0, 1, 1], [], []>} : vector<8x32xf32>, vector<32x128xf32>, vector<8x128xf32> -> vector<8x128xf32>
    %222 = vector.broadcast %10 : vector<1x128xf32> to vector<8x128xf32>
    %223 = arith.addf %221, %222 : vector<8x128xf32>
    %cst_82 = arith.constant dense<0.000000e+00> : vector<8x128xf32>
    %224 = tpu.matmul %202, %8, %cst_82 {dimension_numbers = #tpu.dot_dimension_numbers<[1], [0], [0], [1], [0, 0, 1, 1], [], []>} : vector<8x32xf32>, vector<32x128xf32>, vector<8x128xf32> -> vector<8x128xf32>
    %225 = arith.addf %223, %224 : vector<8x128xf32>
    %226 = math.tanh %225 : vector<8x128xf32>
    %cst_83 = arith.constant 5.000000e-01 : f32
    %227 = vector.broadcast %cst_83 : f32 to vector<8x128xf32>
    %228 = arith.mulf %227, %226 : vector<8x128xf32>
    %cst_84 = arith.constant 5.000000e-01 : f32
    %229 = vector.broadcast %cst_84 : f32 to vector<8x128xf32>
    %230 = arith.addf %228, %229 : vector<8x128xf32>
    %231 = vector.extract_strided_slice %230 {offsets = [0, 32], sizes = [8, 32], strides = [1, 1]} : vector<8x128xf32> to vector<8x32xf32>
    %232 = arith.mulf %231, %199 : vector<8x32xf32>
    %233 = vector.extract_strided_slice %230 {offsets = [0, 0], sizes = [8, 32], strides = [1, 1]} : vector<8x128xf32> to vector<8x32xf32>
    %234 = vector.extract_strided_slice %226 {offsets = [0, 64], sizes = [8, 32], strides = [1, 1]} : vector<8x128xf32> to vector<8x32xf32>
    %235 = arith.mulf %233, %234 : vector<8x32xf32>
    %236 = arith.addf %232, %235 : vector<8x32xf32>
    %237 = vector.extract_strided_slice %230 {offsets = [0, 96], sizes = [8, 32], strides = [1, 1]} : vector<8x128xf32> to vector<8x32xf32>
    %238 = math.tanh %236 : vector<8x32xf32>
    %239 = arith.mulf %237, %238 : vector<8x32xf32>
    %c40_85 = arith.constant 40 : index
    %c0_86 = arith.constant 0 : index
    %240 = vector.load %arg15[%c40_85, %c0_86] : memref<64x32xf32, #tpu.memory_space<vmem>>, vector<8x32xf32>
    tpu.vector_store %arg15[%c40_85, %c0_86], %239 {strides = array<i32>} : memref<64x32xf32, #tpu.memory_space<vmem>>, vector<8x32xf32>,
    %c48 = arith.constant 48 : index
    %c0_87 = arith.constant 0 : index
    %241 = vector.load %arg14[%c48, %c0_87] : memref<64x128xf32, #tpu.memory_space<vmem>>, vector<8x128xf32>
    %cst_88 = arith.constant dense<0.000000e+00> : vector<8x128xf32>
    %242 = tpu.matmul %220, %7, %cst_88 {dimension_numbers = #tpu.dot_dimension_numbers<[1], [0], [0], [1], [0, 0, 1, 1], [], []>} : vector<8x32xf32>, vector<32x128xf32>, vector<8x128xf32> -> vector<8x128xf32>
    %243 = arith.addf %241, %242 : vector<8x128xf32>
    %244 = math.tanh %243 : vector<8x128xf32>
    %cst_89 = arith.constant 5.000000e-01 : f32
    %245 = vector.broadcast %cst_89 : f32 to vector<8x128xf32>
    %246 = arith.mulf %245, %244 : vector<8x128xf32>
    %cst_90 = arith.constant 5.000000e-01 : f32
    %247 = vector.broadcast %cst_90 : f32 to vector<8x128xf32>
    %248 = arith.addf %246, %247 : vector<8x128xf32>
    %249 = vector.extract_strided_slice %248 {offsets = [0, 32], sizes = [8, 32], strides = [1, 1]} : vector<8x128xf32> to vector<8x32xf32>
    %250 = arith.mulf %249, %217 : vector<8x32xf32>
    %251 = vector.extract_strided_slice %248 {offsets = [0, 0], sizes = [8, 32], strides = [1, 1]} : vector<8x128xf32> to vector<8x32xf32>
    %252 = vector.extract_strided_slice %244 {offsets = [0, 64], sizes = [8, 32], strides = [1, 1]} : vector<8x128xf32> to vector<8x32xf32>
    %253 = arith.mulf %251, %252 : vector<8x32xf32>
    %254 = arith.addf %250, %253 : vector<8x32xf32>
    %255 = vector.extract_strided_slice %248 {offsets = [0, 96], sizes = [8, 32], strides = [1, 1]} : vector<8x128xf32> to vector<8x32xf32>
    %256 = math.tanh %254 : vector<8x32xf32>
    %257 = arith.mulf %255, %256 : vector<8x32xf32>
    %cst_91 = arith.constant dense<0.000000e+00> : vector<8x128xf32>
    %258 = tpu.matmul %257, %9, %cst_91 {dimension_numbers = #tpu.dot_dimension_numbers<[1], [0], [0], [1], [0, 0, 1, 1], [], []>} : vector<8x32xf32>, vector<32x128xf32>, vector<8x128xf32> -> vector<8x128xf32>
    %259 = vector.broadcast %10 : vector<1x128xf32> to vector<8x128xf32>
    %260 = arith.addf %258, %259 : vector<8x128xf32>
    %cst_92 = arith.constant dense<0.000000e+00> : vector<8x128xf32>
    %261 = tpu.matmul %239, %8, %cst_92 {dimension_numbers = #tpu.dot_dimension_numbers<[1], [0], [0], [1], [0, 0, 1, 1], [], []>} : vector<8x32xf32>, vector<32x128xf32>, vector<8x128xf32> -> vector<8x128xf32>
    %262 = arith.addf %260, %261 : vector<8x128xf32>
    %263 = math.tanh %262 : vector<8x128xf32>
    %cst_93 = arith.constant 5.000000e-01 : f32
    %264 = vector.broadcast %cst_93 : f32 to vector<8x128xf32>
    %265 = arith.mulf %264, %263 : vector<8x128xf32>
    %cst_94 = arith.constant 5.000000e-01 : f32
    %266 = vector.broadcast %cst_94 : f32 to vector<8x128xf32>
    %267 = arith.addf %265, %266 : vector<8x128xf32>
    %268 = vector.extract_strided_slice %267 {offsets = [0, 32], sizes = [8, 32], strides = [1, 1]} : vector<8x128xf32> to vector<8x32xf32>
    %269 = arith.mulf %268, %236 : vector<8x32xf32>
    %270 = vector.extract_strided_slice %267 {offsets = [0, 0], sizes = [8, 32], strides = [1, 1]} : vector<8x128xf32> to vector<8x32xf32>
    %271 = vector.extract_strided_slice %263 {offsets = [0, 64], sizes = [8, 32], strides = [1, 1]} : vector<8x128xf32> to vector<8x32xf32>
    %272 = arith.mulf %270, %271 : vector<8x32xf32>
    %273 = arith.addf %269, %272 : vector<8x32xf32>
    %274 = vector.extract_strided_slice %267 {offsets = [0, 96], sizes = [8, 32], strides = [1, 1]} : vector<8x128xf32> to vector<8x32xf32>
    %275 = math.tanh %273 : vector<8x32xf32>
    %276 = arith.mulf %274, %275 : vector<8x32xf32>
    %c48_95 = arith.constant 48 : index
    %c0_96 = arith.constant 0 : index
    %277 = vector.load %arg15[%c48_95, %c0_96] : memref<64x32xf32, #tpu.memory_space<vmem>>, vector<8x32xf32>
    tpu.vector_store %arg15[%c48_95, %c0_96], %276 {strides = array<i32>} : memref<64x32xf32, #tpu.memory_space<vmem>>, vector<8x32xf32>,
    %c56 = arith.constant 56 : index
    %c0_97 = arith.constant 0 : index
    %278 = vector.load %arg14[%c56, %c0_97] : memref<64x128xf32, #tpu.memory_space<vmem>>, vector<8x128xf32>
    %cst_98 = arith.constant dense<0.000000e+00> : vector<8x128xf32>
    %279 = tpu.matmul %257, %7, %cst_98 {dimension_numbers = #tpu.dot_dimension_numbers<[1], [0], [0], [1], [0, 0, 1, 1], [], []>} : vector<8x32xf32>, vector<32x128xf32>, vector<8x128xf32> -> vector<8x128xf32>
    %280 = arith.addf %278, %279 : vector<8x128xf32>
    %281 = math.tanh %280 : vector<8x128xf32>
    %cst_99 = arith.constant 5.000000e-01 : f32
    %282 = vector.broadcast %cst_99 : f32 to vector<8x128xf32>
    %283 = arith.mulf %282, %281 : vector<8x128xf32>
    %cst_100 = arith.constant 5.000000e-01 : f32
    %284 = vector.broadcast %cst_100 : f32 to vector<8x128xf32>
    %285 = arith.addf %283, %284 : vector<8x128xf32>
    %286 = vector.extract_strided_slice %285 {offsets = [0, 32], sizes = [8, 32], strides = [1, 1]} : vector<8x128xf32> to vector<8x32xf32>
    %287 = arith.mulf %286, %254 : vector<8x32xf32>
    %288 = vector.extract_strided_slice %285 {offsets = [0, 0], sizes = [8, 32], strides = [1, 1]} : vector<8x128xf32> to vector<8x32xf32>
    %289 = vector.extract_strided_slice %281 {offsets = [0, 64], sizes = [8, 32], strides = [1, 1]} : vector<8x128xf32> to vector<8x32xf32>
    %290 = arith.mulf %288, %289 : vector<8x32xf32>
    %291 = arith.addf %287, %290 : vector<8x32xf32>
    %292 = vector.extract_strided_slice %285 {offsets = [0, 96], sizes = [8, 32], strides = [1, 1]} : vector<8x128xf32> to vector<8x32xf32>
    %293 = math.tanh %291 : vector<8x32xf32>
    %294 = arith.mulf %292, %293 : vector<8x32xf32>
    %cst_101 = arith.constant dense<0.000000e+00> : vector<8x128xf32>
    %295 = tpu.matmul %294, %9, %cst_101 {dimension_numbers = #tpu.dot_dimension_numbers<[1], [0], [0], [1], [0, 0, 1, 1], [], []>} : vector<8x32xf32>, vector<32x128xf32>, vector<8x128xf32> -> vector<8x128xf32>
    %296 = vector.broadcast %10 : vector<1x128xf32> to vector<8x128xf32>
    %297 = arith.addf %295, %296 : vector<8x128xf32>
    %cst_102 = arith.constant dense<0.000000e+00> : vector<8x128xf32>
    %298 = tpu.matmul %276, %8, %cst_102 {dimension_numbers = #tpu.dot_dimension_numbers<[1], [0], [0], [1], [0, 0, 1, 1], [], []>} : vector<8x32xf32>, vector<32x128xf32>, vector<8x128xf32> -> vector<8x128xf32>
    %299 = arith.addf %297, %298 : vector<8x128xf32>
    %300 = math.tanh %299 : vector<8x128xf32>
    %cst_103 = arith.constant 5.000000e-01 : f32
    %301 = vector.broadcast %cst_103 : f32 to vector<8x128xf32>
    %302 = arith.mulf %301, %300 : vector<8x128xf32>
    %cst_104 = arith.constant 5.000000e-01 : f32
    %303 = vector.broadcast %cst_104 : f32 to vector<8x128xf32>
    %304 = arith.addf %302, %303 : vector<8x128xf32>
    %305 = vector.extract_strided_slice %304 {offsets = [0, 32], sizes = [8, 32], strides = [1, 1]} : vector<8x128xf32> to vector<8x32xf32>
    %306 = arith.mulf %305, %273 : vector<8x32xf32>
    %307 = vector.extract_strided_slice %304 {offsets = [0, 0], sizes = [8, 32], strides = [1, 1]} : vector<8x128xf32> to vector<8x32xf32>
    %308 = vector.extract_strided_slice %300 {offsets = [0, 64], sizes = [8, 32], strides = [1, 1]} : vector<8x128xf32> to vector<8x32xf32>
    %309 = arith.mulf %307, %308 : vector<8x32xf32>
    %310 = arith.addf %306, %309 : vector<8x32xf32>
    %311 = vector.extract_strided_slice %304 {offsets = [0, 96], sizes = [8, 32], strides = [1, 1]} : vector<8x128xf32> to vector<8x32xf32>
    %312 = math.tanh %310 : vector<8x32xf32>
    %313 = arith.mulf %311, %312 : vector<8x32xf32>
    %c56_105 = arith.constant 56 : index
    %c0_106 = arith.constant 0 : index
    %314 = vector.load %arg15[%c56_105, %c0_106] : memref<64x32xf32, #tpu.memory_space<vmem>>, vector<8x32xf32>
    tpu.vector_store %arg15[%c56_105, %c0_106], %313 {strides = array<i32>} : memref<64x32xf32, #tpu.memory_space<vmem>>, vector<8x32xf32>,
    %c0_107 = arith.constant 0 : index
    %c0_108 = arith.constant 0 : index
    %c0_109 = arith.constant 0 : index
    %315 = vector.load %arg12[%c0_107, %c0_108, %c0_109] : memref<2x8x32xf32, #tpu.memory_space<vmem>>, vector<1x8x32xf32>
    %316 = vector.shape_cast %315 : vector<1x8x32xf32> to vector<8x32xf32>
    %317 = vector.shape_cast %294 : vector<8x32xf32> to vector<1x8x32xf32>
    tpu.vector_store %arg12[%c0_107, %c0_108, %c0_109], %317 {strides = array<i32>} : memref<2x8x32xf32, #tpu.memory_space<vmem>>, vector<1x8x32xf32>,
    %c0_110 = arith.constant 0 : index
    %c0_111 = arith.constant 0 : index
    %c0_112 = arith.constant 0 : index
    %318 = vector.load %arg13[%c0_110, %c0_111, %c0_112] : memref<2x8x32xf32, #tpu.memory_space<vmem>>, vector<1x8x32xf32>
    %319 = vector.shape_cast %318 : vector<1x8x32xf32> to vector<8x32xf32>
    %320 = vector.shape_cast %291 : vector<8x32xf32> to vector<1x8x32xf32>
    tpu.vector_store %arg13[%c0_110, %c0_111, %c0_112], %320 {strides = array<i32>} : memref<2x8x32xf32, #tpu.memory_space<vmem>>, vector<1x8x32xf32>,
    %c1_113 = arith.constant 1 : index
    %c0_114 = arith.constant 0 : index
    %c0_115 = arith.constant 0 : index
    %321 = vector.load %arg12[%c1_113, %c0_114, %c0_115] : memref<2x8x32xf32, #tpu.memory_space<vmem>>, vector<1x8x32xf32>
    %322 = vector.shape_cast %321 : vector<1x8x32xf32> to vector<8x32xf32>
    %323 = vector.shape_cast %313 : vector<8x32xf32> to vector<1x8x32xf32>
    tpu.vector_store %arg12[%c1_113, %c0_114, %c0_115], %323 {strides = array<i32>} : memref<2x8x32xf32, #tpu.memory_space<vmem>>, vector<1x8x32xf32>,
    %c1_116 = arith.constant 1 : index
    %c0_117 = arith.constant 0 : index
    %c0_118 = arith.constant 0 : index
    %324 = vector.load %arg13[%c1_116, %c0_117, %c0_118] : memref<2x8x32xf32, #tpu.memory_space<vmem>>, vector<1x8x32xf32>
    %325 = vector.shape_cast %324 : vector<1x8x32xf32> to vector<8x32xf32>
    %326 = vector.shape_cast %310 : vector<8x32xf32> to vector<1x8x32xf32>
    tpu.vector_store %arg13[%c1_116, %c0_117, %c0_118], %326 {strides = array<i32>} : memref<2x8x32xf32, #tpu.memory_space<vmem>>, vector<1x8x32xf32>,
    %c0_119 = arith.constant 0 : index
    %c0_120 = arith.constant 0 : index
    %327 = vector.load %arg15[%c0_119, %c0_120] : memref<64x32xf32, #tpu.memory_space<vmem>>, vector<64x32xf32>
    %c0_121 = arith.constant 0 : index
    %c0_122 = arith.constant 0 : index
    %328 = vector.load %arg7[%c0_121, %c0_122] : memref<32x128xf32, #tpu.memory_space<vmem>>, vector<32x128xf32>
    %cst_123 = arith.constant dense<0.000000e+00> : vector<64x128xf32>
    %329 = tpu.matmul %327, %328, %cst_123 {dimension_numbers = #tpu.dot_dimension_numbers<[1], [0], [0], [1], [0, 0, 1, 1], [], []>} : vector<64x32xf32>, vector<32x128xf32>, vector<64x128xf32> -> vector<64x128xf32>
    %c0_124 = arith.constant 0 : index
    %c0_125 = arith.constant 0 : index
    %330 = vector.load %arg8[%c0_124, %c0_125] : memref<1x128xf32, #tpu.memory_space<vmem>>, vector<1x128xf32>
    %331 = vector.broadcast %330 : vector<1x128xf32> to vector<64x128xf32>
    %332 = arith.addf %329, %331 : vector<64x128xf32>
    %c0_126 = arith.constant 0 : index
    %c0_127 = arith.constant 0 : index
    %333 = vector.load %arg11[%c0_126, %c0_127] : memref<64x128xf32, #tpu.memory_space<vmem>>, vector<64x128xf32>
    tpu.vector_store %arg11[%c0_126, %c0_127], %332 {strides = array<i32>} : memref<64x128xf32, #tpu.memory_space<vmem>>, vector<64x128xf32>,
    return
  }
}

</mosaic_0001>

<bundles_post_ra>
// kernel: network_forward.1
= control target key start
LH: loop header
LB: loop body
LE: loop exit
PB: predicated region body
PF: predicated region fallthrough
CT: control target
= control target key end

     0   :  { %vm54_vm0 = vcmask 64512   ;;  %vm148_vm1 = vcmask 261120   ;;  %s1316_s26 = smov 64   ;;  %s1317_s29 = smov 32   ;;  %s1819_s1 = inlined_call_operand.vmem [shape: f32[8,128], index: 1, kind: input, shape index: {}]   ;;  %s1820_s0 = inlined_call_operand.vmem [shape: f32[64,8], index: 0, kind: input, shape index: {}]   ;;  %s1821_s2 = inlined_call_operand.vmem [shape: f32[32,128], index: 2, kind: input, shape index: {}]   ;;  %s1822_s3 = inlined_call_operand.vmem [shape: f32[1,128], index: 3, kind: input, shape index: {}]   ;;  %s1823_s9 = inlined_call_operand.vmem [shape: f32[2,8,32], index: 9, kind: input, shape index: {}]   ;;  %s1824_s10 = inlined_call_operand.vmem [shape: f32[2,8,32], index: 10, kind: input, shape index: {}]   ;;  %s1825_s4 = inlined_call_operand.vmem [shape: f32[32,128], index: 4, kind: input, shape index: {}]   ;;  %s1826_s5 = inlined_call_operand.vmem [shape: f32[32,128], index: 5, kind: input, shape index: {}]   ;;  %s1827_s6 = inlined_call_operand.vmem [shape: f32[1,128], index: 6, kind: input, shape index: {}]   ;;  %s1828_s7 = inlined_call_operand.vmem [shape: f32[32,128], index: 7, kind: input, shape index: {}]   ;;  %s1829_s8 = inlined_call_operand.vmem [shape: f32[1,128], index: 8, kind: input, shape index: {}]   ;;  %s1830_s11 = inlined_call_operand.vmem [shape: f32[64,128], index: 11, kind: output, shape index: {0}]   ;;  %s1831_s12 = inlined_call_operand.vmem [shape: f32[2,8,32], index: 12, kind: output, shape index: {1}]   ;;  %s1832_s13 = inlined_call_operand.vmem [shape: f32[2,8,32], index: 13, kind: output, shape index: {2}]  }
   0x1   :  { %v49_v0 = vld [vmem:[%s1819_s1] sm:$0xff]  ;;  %v43_v1 = vld [vmem:[%s1820_s0 + $0x10] sm:$0xff]  ;;  %v1398_v2 = vld [vmem:[%s1821_s2 + $0x18] sm:$0xff] }
   0x2   :  { %1243 = vmatpush.msra.mxu1 %v49_v0  ;;  %94 = vmatpush.msra.mxu0 %v49_v0  ;;  %v1404_v3 = vld [vmem:[%s1821_s2 + $0x10] sm:$0xff]  ;;  %v41_v4 = vld [vmem:[%s1820_s0] sm:$0xff]  ;;  %v1414_v5 = vld [vmem:[%s1821_s2 + $0x8] sm:$0xff] }
   0x3   :  { %1201 = vmatmul.msk.f32.vlgmr.msra.gmra.mxu1 %vm54_vm0, %v43_v1  ;;  %1244 = vmatpush.msra.mxu2 %v49_v0  ;;  %v1420_v6 = vld [vmem:[%s1821_s2] sm:$0xff]  ;;  %v44_v7 = vld [vmem:[%s1820_s0 + $0x18] sm:$0xff]  ;;  %v47_v29 = vld [vmem:[%s1820_s0 + $0x30] sm:$0xff] }
   0x4   :  { %164 = vmatpush.msrb.mxu1 %v1398_v2  ;;  %1199 = vmatmul.msk.f32.vlgmr.msra.gmra.mxu0 %vm54_vm0, %v41_v4  ;;  %v141_v8 = vld [vmem:[%s1823_s9] sm:$0xff]  ;;  %v1466_v28 = vld [vmem:[%s1825_s4 + $0x18] sm:$0xff]  ;;  %v1481_v31 = vld [vmem:[%s1825_s4 + $0x10] sm:$0xff] }
   0x5   :  { %1245 = vmatpush.msra.mxu3 %v49_v0  ;;  %v1447_v12 = vld [vmem:[%s1822_s3] ss:$0 sm:$0xff]  ;;  %v1476_v30 = vld [vmem:[%s1826_s5 + $0x18] sm:$0xff]  ;;  %v1486_v32 = vld [vmem:[%s1826_s5 + $0x10] sm:$0xff]  ;;  %217 = vmatpush.msrb.mxu2 %v1466_v28 }
   0x6   :  { %165 = vmatpush.msrb.mxu1 %v1404_v3  ;;  %v144_v17 = vld [vmem:[%s1824_s10] sm:$0xff]  ;;  %1205 = vmatmul.msk.f32.vlgmr.msra.gmra.mxu3 %vm54_vm0, %v47_v29  ;;  %v1493_v33 = vld [vmem:[%s1825_s4 + $0x8] sm:$0xff]  ;;  %v48_v39 = vld [vmem:[%s1820_s0 + $0x38] sm:$0xff] }
   0x7   :  { %v45_v27 = vld [vmem:[%s1820_s0 + $0x20] sm:$0xff]  ;;  %240 = vmatpush.msrb.mxu3 %v1476_v30  ;;  %v1498_v34 = vld [vmem:[%s1826_s5 + $0x8] sm:$0xff]  ;;  %218 = vmatpush.msrb.mxu2 %v1481_v31 }
   0x8   :  { %166 = vmatpush.msrb.mxu1 %v1414_v5  ;;  %1203 = vmatmul.msk.f32.vlgmr.msra.gmra.mxu2 %vm54_vm0, %v45_v27  ;;  %v42_v35 = vld [vmem:[%s1820_s0 + $0x8] sm:$0xff]  ;;  %v1508_v36 = vld [vmem:[%s1825_s4] sm:$0xff] }
   0x9   :  { %241 = vmatpush.msrb.mxu3 %v1486_v32  ;;  %v1514_v37 = vld [vmem:[%s1826_s5] sm:$0xff]  ;;  %v46_v38 = vld [vmem:[%s1820_s0 + $0x28] sm:$0xff]  ;;  %219 = vmatpush.msrb.mxu2 %v1493_v33 }
   0xa   :  { %167 = vmatpush.msrb.mxu1 %v1420_v6  ;;  %v1207_v42 = vld [vmem:[%s1823_s9 + $0x8] sm:$0xff]  ;;  %v1571_v53 = vld [vmem:[%s1827_s6] ss:$0 sm:$0xff]  ;;  %s1318_s6 = smov 96  }
   0xb   :  { %1202 = vmatmul.msk.f32.gmra.mxu1 %vm54_vm0, %v44_v7  ;;  %242 = vmatpush.msrb.mxu3 %v1498_v34  ;;  %v1208_v43 = vld [vmem:[%s1824_s10 + $0x8] sm:$0xff]  ;;  %v1106_v29 = vld [vmem:[%s1828_s7] sm:$0xff] }
   0xc   :  { %291 = vmatpush.msra.mxu1 %v1398_v2  ;;  %1200 = vmatmul.msk.f32.gmra.mxu0 %vm54_vm0, %v42_v35  ;;  %v1107_v27 = vld [vmem:[%s1828_s7 + $0x8] sm:$0xff] }
   0xd   :  { %220 = vmatpush.msrb.mxu2 %v1508_v36  ;;  %243 = vmatpush.msrb.mxu3 %v1514_v37 }
   0xe   :  { %292 = vmatpush.msra.mxu1 %v1404_v3  ;;  %1206 = vmatmul.msk.f32.gmra.mxu3 %vm54_vm0, %v48_v39 }
   0xf   :  { %337 = vmatpush.msra.mxu2 %v1466_v28  ;;  %359 = vmatpush.msra.mxu3 %v1476_v30 }
  0x10   :  { %293 = vmatpush.msra.mxu1 %v1414_v5  ;;  %1204 = vmatmul.msk.f32.gmra.mxu2 %vm54_vm0, %v46_v38 }
  0x11   :  { %338 = vmatpush.msra.mxu2 %v1481_v31  ;;  %360 = vmatpush.msra.mxu3 %v1486_v32 }
  0x12   :  { %294 = vmatpush.msra.mxu1 %v1420_v6 }
  0x13   :  { %1209 = vmatmul.msk.f32.vlgmr.msrb.gmra.mxu1 %vm148_vm1, %v141_v8  ;;  %339 = vmatpush.msra.mxu2 %v1493_v33 }
  0x14   :  { %406 = vmatpush.msrb.mxu1 %v1398_v2  ;;  %361 = vmatpush.msra.mxu3 %v1498_v34 }
  0x15   :  { %340 = vmatpush.msra.mxu2 %v1508_v36 }
  0x16   :  { %407 = vmatpush.msrb.mxu1 %v1404_v3  ;;  %362 = vmatpush.msra.mxu3 %v1514_v37 }
  0x17   :  { %1211 = vmatmul.msk.f32.vlgmr.msrb.gmra.mxu3 %vm148_vm1, %v1207_v42 }
  0x18   :  { %408 = vmatpush.msrb.mxu1 %v1414_v5  ;;  %474 = vmatpush.msrb.mxu3 %v1476_v30 }
  0x1a   :  { %409 = vmatpush.msrb.mxu1 %v1420_v6  ;;  %475 = vmatpush.msrb.mxu3 %v1486_v32 }
  0x1c   :  { %476 = vmatpush.msrb.mxu3 %v1498_v34 }
  0x1e   :  { %477 = vmatpush.msrb.mxu3 %v1514_v37 }
  0x80   :  { %v1440_v9 = vpop.f32.mrf.mxu1 }
  0x81   :  { %v96_v11 = vpop.f32.mrf.mxu0  ;;  %v103_v39 = vadd.f32 %v1447_v12, %v1440_v9 }
  0x82   :  { %v97_v13 = vadd.f32 %v1447_v12, %v96_v11 }
  0x88   :  { %v1442_v10 = vpop.f32.mrf.mxu1 }
  0x89   :  { %v1561_v46 = vpop.f32.mrf.mxu3  ;;  %v99_v47 = vpop.f32.mrf.mxu0 }
  0x8a   :  { %v100_v50 = vadd.f32 %v1447_v12, %v99_v47  ;;  %v1625_v47 = vld [vmem:[%s1829_s8] ss:$0 sm:$0xff] }
  0x8b   :  { %v1559_v45 = vpop.f32.mrf.mxu2 }
  0x90   :  { %v169_v14 = vpop.f32.mrf.mxu1 }
  0x91   :  { %v172_v15 = vadd.f32 %v169_v14, %v97_v13  ;;  %v1565_v49 = vpop.f32.mrf.mxu3 }
  0x93   :  { %1252 = vtanh.f32 %v172_v15  ;;  %v1563_v48 = vpop.f32.mrf.mxu2 }
  0x99   :  { %v1253_v16 = vpop.eup %1252 }
  0x9a   :  { %182 = vrot.lane.b32.xlu0 %v1253_v16, %s1316_s26  ;;  %v174_v18 = vmul.f32 0.5, %v1253_v16  ;;  %v245_v55 = vpop.f32.mrf.mxu3 }
  0x9c   :  { %v175_v19 = vadd.f32 0.5, %v174_v18 }
  0xa2   :  { %177 = vrot.lane.b32.xlu0 %v144_v17, %s1317_s29 }
 0x10c   :  { %v183_v20 = vpop.permute.xlu0 %182 }
 0x10d   :  { %v185_v21 = vmul.f32 %v183_v20, %v175_v19 }
 0x10f   :  { %187 = vrot.lane.b32.xlu1 %v185_v21, %s1317_s29 }
 0x114   :  { %v178_v22 = vpop.permute.xlu0 %177 }
 0x115   :  { %v180_v23 = vmul.f32 %v178_v22, %v175_v19 }
 0x181   :  { %v188_v24 = vpop.permute.xlu1 %187 }
 0x182   :  { %v1456_v25 = vadd.f32 %v188_v24, %v180_v23 }
 0x184   :  { %1254 = vtanh.f32 %v1456_v25 }
 0x18a   :  { %v1255_v26 = vpop.eup %1254 }
 0x18b   :  { %193 = vrot.lane.b32.xlu1 %v1255_v26, %s1316_s26  ;;  %v1108_v26 = vld [vmem:[%s1828_s7 + $0x10] sm:$0xff] }
 0x193   :  { %253 = vrot.lane.b32.xlu1 %v1208_v43, %s1317_s29 }
 0x1fd   :  { %v194_v40 = vpop.permute.xlu1 %193 }
 0x1fe   :  { %v196_v41 = vmul.f32 %v194_v40, %v175_v19 }
 0x200   :  { %201 = vrot.lane.b32.xlu2 %v196_v41, %s1317_s29 }
 0x205   :  { %v254_v15 = vpop.permute.xlu1 %253 }
 0x25a   :  { %v202_v44 = vpop.permute.xlu2 %201 }
 0x25b   :  { %1210 = vmatmul.msk.f32.vlgmr.msrb.gmra.mxu2 %vm148_vm1, %v202_v44  ;;  %1212 = vmatmul.msk.f32.vlgmr.msra.gmra.mxu1 %vm148_vm1, %v202_v44 }
 0x25c   :  { %452 = vmatpush.msrb.mxu2 %v1466_v28  ;;  %521 = vmatpush.msra.mxu1 %v1398_v2 }
 0x25e   :  { %453 = vmatpush.msrb.mxu2 %v1481_v31  ;;  %522 = vmatpush.msra.mxu1 %v1404_v3 }
 0x260   :  { %454 = vmatpush.msrb.mxu2 %v1493_v33  ;;  %523 = vmatpush.msra.mxu1 %v1414_v5 }
 0x262   :  { %455 = vmatpush.msrb.mxu2 %v1508_v36  ;;  %524 = vmatpush.msra.mxu1 %v1420_v6 }
 0x2d8   :  { %v296_v51 = vpop.f32.mrf.mxu1 }
 0x2d9   :  { %v299_v52 = vadd.f32 %v296_v51, %v100_v50 }
 0x2db   :  { %1256 = vtanh.f32 %v299_v52 }
 0x2de   :  { %v222_v54 = vpop.f32.mrf.mxu2 }
 0x2df   :  { %v223_v56 = vadd.f32 %v1571_v53, %v222_v54 }
 0x2e1   :  { %v1257_v57 = vpop.eup %1256  ;;  %v248_v58 = vadd.f32 %v245_v55, %v223_v56 }
 0x2e2   :  { %305 = vrot.lane.b32.xlu2 %v1257_v57, %s1316_s26  ;;  %v301_v60 = vmul.f32 0.5, %v1257_v57 }
 0x2e3   :  { %1258 = vtanh.f32 %v248_v58 }
 0x2e4   :  { %v302_v61 = vadd.f32 0.5, %v301_v60 }
 0x2e6   :  { %v303_v8 = vmul.f32 %v302_v61, %v1456_v25  ;;  %v1109_v25 = vld [vmem:[%s1828_s7 + $0x18] sm:$0xff] }
 0x2e7   :  { %1150 = vmatpush.msrb.mxu0 %v1109_v25 }
 0x2e9   :  { %v1259_v59 = vpop.eup %1258  ;;  %1151 = vmatpush.msrb.mxu0 %v1108_v26 }
 0x2ea   :  { %258 = vrot.lane.b32.xlu0 %v1259_v59, %s1316_s26  ;;  %v250_v0 = vmul.f32 0.5, %v1259_v59 }
 0x2eb   :  { %1152 = vmatpush.msrb.mxu0 %v1107_v27 }
 0x2ec   :  { %v251_v1 = vadd.f32 0.5, %v250_v0 }
 0x2ed   :  { %1153 = vmatpush.msrb.mxu0 %v1106_v29 }
 0x2ee   :  { %v256_v16 = vmul.f32 %v254_v15, %v251_v1 }
 0x33c   :  { %v306_v62 = vpop.permute.xlu2 %305 }
 0x33d   :  { %v308_v63 = vmul.f32 %v306_v62, %v302_v61 }
 0x33f   :  { %310 = vrot.lane.b32.xlu2 %v308_v63, %s1317_s29 }
 0x35c   :  { %v259_v4 = vpop.permute.xlu0 %258 }
 0x35d   :  { %v261_v7 = vmul.f32 %v259_v4, %v251_v1 }
 0x35f   :  { %263 = vrot.lane.b32.xlu0 %v261_v7, %s1317_s29 }
 0x399   :  { %v311_v11 = vpop.permute.xlu2 %310 }
 0x39a   :  { %v1579_v13 = vadd.f32 %v311_v11, %v303_v8 }
 0x39c   :  { %1260 = vtanh.f32 %v1579_v13 }
 0x3a2   :  { %v1261_v14 = vpop.eup %1260 }
 0x3a3   :  { %316 = vrot.lane.b32.xlu1 %v1261_v14, %s1316_s26 }
 0x3d1   :  { %v264_v17 = vpop.permute.xlu0 %263 }
 0x3d2   :  { %v1583_v18 = vadd.f32 %v264_v17, %v256_v16 }
 0x3d4   :  { %1262 = vtanh.f32 %v1583_v18 }
 0x3da   :  { %v1263_v19 = vpop.eup %1262 }
 0x3db   :  { %269 = vrot.lane.b32.xlu2 %v1263_v19, %s1316_s26 }
 0x415   :  { %v317_v20 = vpop.permute.xlu1 %316 }
 0x416   :  { %v319_v21 = vmul.f32 %v317_v20, %v302_v61 }
 0x418   :  { %321 = vrot.lane.b32.xlu0 %v319_v21, %s1317_s29  ;;  %v106_v21 = vadd.f32 %v1447_v12, %v1442_v10 }
 0x435   :  { %v270_v22 = vpop.permute.xlu2 %269 }
 0x436   :  { %v272_v23 = vmul.f32 %v270_v22, %v251_v1 }
 0x438   :  { %274 = vrot.lane.b32.xlu1 %v272_v23, %s1317_s29 }
 0x48a   :  { %v322_v24 = vpop.permute.xlu0 %321 }
 0x48b   :  { %1213 = vmatmul.msk.f32.vlgmr.msra.gmra.mxu2 %vm148_vm1, %v322_v24  ;;  %1215 = vmatmul.msk.f32.vlgmr.msrb.gmra.mxu1 %vm148_vm1, %v322_v24 }
 0x48c   :  { %567 = vmatpush.msra.mxu2 %v1466_v28  ;;  %636 = vmatpush.msrb.mxu1 %v1398_v2 }
 0x48e   :  { %568 = vmatpush.msra.mxu2 %v1481_v31  ;;  %637 = vmatpush.msrb.mxu1 %v1404_v3 }
 0x490   :  { %569 = vmatpush.msra.mxu2 %v1493_v33  ;;  %638 = vmatpush.msrb.mxu1 %v1414_v5 }
 0x492   :  { %570 = vmatpush.msra.mxu2 %v1508_v36  ;;  %639 = vmatpush.msrb.mxu1 %v1420_v6 }
 0x4aa   :  { %v275_v35 = vpop.permute.xlu1 %274 }
 0x4ab   :  { %277 = vst.msk [vmem:[#allocation3] sm:$0xff] %vm148_vm1, %v275_v35  ;;  %1214 = vmatmul.msk.f32.vlgmr.msra.gmra.mxu3 %vm148_vm1, %v275_v35 }
 0x4ac   :  { %589 = vmatpush.msra.mxu3 %v1476_v30 }
 0x4ae   :  { %590 = vmatpush.msra.mxu3 %v1486_v32 }
 0x4b0   :  { %591 = vmatpush.msra.mxu3 %v1498_v34 }
 0x4b2   :  { %v1098_v38 = vld [vmem:[#allocation3] sm:$0xff]  ;;  %592 = vmatpush.msra.mxu3 %v1514_v37 }
 0x4b3   :  { %1235 = vmatmul.msk.f32.vlgmr.msrb.gmra.mxu0 %vm148_vm1, %v1098_v38 }
 0x508   :  { %v411_v40 = vpop.f32.mrf.mxu1 }
 0x509   :  { %v414_v41 = vadd.f32 %v411_v40, %v103_v39 }
 0x50b   :  { %1264 = vtanh.f32 %v414_v41 }
 0x50e   :  { %v342_v43 = vpop.f32.mrf.mxu2 }
 0x50f   :  { %v343_v44 = vadd.f32 %v1571_v53, %v342_v43 }
 0x511   :  { %v1265_v42 = vpop.eup %1264 }
 0x512   :  { %420 = vrot.lane.b32.xlu2 %v1265_v42, %s1316_s26  ;;  %v416_v55 = vmul.f32 0.5, %v1265_v42 }
 0x514   :  { %v417_v56 = vadd.f32 0.5, %v416_v55 }
 0x516   :  { %v418_v63 = vmul.f32 %v417_v56, %v1579_v13 }
 0x52e   :  { %v364_v50 = vpop.f32.mrf.mxu3 }
 0x52f   :  { %v367_v51 = vadd.f32 %v364_v50, %v343_v44 }
 0x530   :  { %v1155_v52 = vpop.f32.mrf.mxu0 }
 0x531   :  { %1266 = vtanh.f32 %v367_v51  ;;  %v1156_v9 = vadd.f32 %v1625_v47, %v1155_v52 }
 0x533   :  { %1179 = vst [vmem:[%s1830_s11] sm:$0xff] %v1156_v9 }
 0x537   :  { %v1267_v54 = vpop.eup %1266 }
 0x538   :  { %373 = vrot.lane.b32.xlu0 %v1267_v54, %s1316_s26  ;;  %v369_v59 = vmul.f32 0.5, %v1267_v54 }
 0x53a   :  { %v370_v60 = vadd.f32 0.5, %v369_v59 }
 0x53c   :  { %v371_v7 = vmul.f32 %v370_v60, %v1583_v18 }
 0x56c   :  { %v421_v57 = vpop.permute.xlu2 %420 }
 0x56d   :  { %v423_v58 = vmul.f32 %v421_v57, %v417_v56 }
 0x56f   :  { %425 = vrot.lane.b32.xlu1 %v423_v58, %s1317_s29 }
 0x5aa   :  { %v374_v61 = vpop.permute.xlu0 %373 }
 0x5ab   :  { %v376_v62 = vmul.f32 %v374_v61, %v370_v60 }
 0x5ad   :  { %378 = vrot.lane.b32.xlu2 %v376_v62, %s1317_s29 }
 0x5e1   :  { %v426_v0 = vpop.permute.xlu1 %425 }
 0x5e2   :  { %v428_v1 = vadd.f32 %v426_v0, %v418_v63 }
 0x5e4   :  { %1268 = vtanh.f32 %v428_v1 }
 0x5ea   :  { %v1269_v4 = vpop.eup %1268 }
 0x5eb   :  { %431 = vrot.lane.b32.xlu0 %v1269_v4, %s1316_s26 }
 0x607   :  { %v379_v8 = vpop.permute.xlu2 %378 }
 0x608   :  { %v381_v11 = vadd.f32 %v379_v8, %v371_v7  ;;  %v109_v7 = vadd.f32 %v1447_v12, %v1559_v45 }
 0x60a   :  { %1270 = vtanh.f32 %v381_v11 }
 0x610   :  { %v1271_v14 = vpop.eup %1270 }
 0x611   :  { %384 = vrot.lane.b32.xlu1 %v1271_v14, %s1316_s26 }
 0x65d   :  { %v432_v15 = vpop.permute.xlu0 %431 }
 0x65e   :  { %v434_v16 = vmul.f32 %v432_v15, %v417_v56 }
 0x660   :  { %436 = vrot.lane.b32.xlu2 %v434_v16, %s1317_s29 }
 0x683   :  { %v385_v17 = vpop.permute.xlu1 %384 }
 0x684   :  { %v387_v13 = vmul.f32 %v385_v17, %v370_v60 }
 0x686   :  { %389 = vrot.lane.b32.xlu0 %v387_v13, %s1317_s29 }
 0x6ba   :  { %v437_v19 = vpop.permute.xlu2 %436 }
 0x6bb   :  { %1216 = vmatmul.msk.f32.vlgmr.msrb.gmra.mxu2 %vm148_vm1, %v437_v19  ;;  %1218 = vmatmul.msk.f32.vlgmr.msra.gmra.mxu1 %vm148_vm1, %v437_v19 }
 0x6bc   :  { %682 = vmatpush.msrb.mxu2 %v1466_v28  ;;  %751 = vmatpush.msra.mxu1 %v1398_v2 }
 0x6be   :  { %683 = vmatpush.msrb.mxu2 %v1481_v31  ;;  %752 = vmatpush.msra.mxu1 %v1404_v3 }
 0x6c0   :  { %684 = vmatpush.msrb.mxu2 %v1493_v33  ;;  %753 = vmatpush.msra.mxu1 %v1414_v5 }
 0x6c2   :  { %685 = vmatpush.msrb.mxu2 %v1508_v36  ;;  %754 = vmatpush.msra.mxu1 %v1420_v6 }
 0x6f8   :  { %v390_v18 = vpop.permute.xlu0 %389 }
 0x6f9   :  { %392 = vst.msk [vmem:[#allocation3 + $0x8] sm:$0xff] %vm148_vm1, %v390_v18  ;;  %1217 = vmatmul.msk.f32.vlgmr.msrb.gmra.mxu3 %vm148_vm1, %v390_v18 }
 0x6fa   :  { %704 = vmatpush.msrb.mxu3 %v1476_v30 }
 0x6fc   :  { %705 = vmatpush.msrb.mxu3 %v1486_v32 }
 0x6fe   :  { %706 = vmatpush.msrb.mxu3 %v1498_v34 }
 0x700   :  { %v1099_v20 = vld [vmem:[#allocation3 + $0x8] sm:$0xff]  ;;  %707 = vmatpush.msrb.mxu3 %v1514_v37 }
 0x701   :  { %1236 = vmatmul.msk.f32.gmra.mxu0 %vm148_vm1, %v1099_v20 }
 0x738   :  { %v526_v22 = vpop.f32.mrf.mxu1 }
 0x739   :  { %v529_v23 = vadd.f32 %v526_v22, %v106_v21 }
 0x73b   :  { %1272 = vtanh.f32 %v529_v23 }
 0x73e   :  { %v457_v25 = vpop.f32.mrf.mxu2 }
 0x73f   :  { %v458_v26 = vadd.f32 %v1571_v53, %v457_v25 }
 0x741   :  { %v1273_v24 = vpop.eup %1272 }
 0x742   :  { %535 = vrot.lane.b32.xlu1 %v1273_v24, %s1316_s26  ;;  %v531_v39 = vmul.f32 0.5, %v1273_v24 }
 0x744   :  { %v532_v40 = vadd.f32 0.5, %v531_v39 }
 0x746   :  { %v533_v52 = vmul.f32 %v532_v40, %v428_v1 }
 0x77c   :  { %v479_v27 = vpop.f32.mrf.mxu3 }
 0x77d   :  { %v482_v29 = vadd.f32 %v479_v27, %v458_v26 }
 0x77e   :  { %v1158_v35 = vpop.f32.mrf.mxu0 }
 0x77f   :  { %1274 = vtanh.f32 %v482_v29  ;;  %v1159_v38 = vadd.f32 %v1625_v47, %v1158_v35 }
 0x781   :  { %1180 = vst [vmem:[%s1830_s11 + $0x8] sm:$0xff] %v1159_v38 }
 0x785   :  { %v1275_v10 = vpop.eup %1274 }
 0x786   :  { %488 = vrot.lane.b32.xlu2 %v1275_v10, %s1316_s26  ;;  %v484_v43 = vmul.f32 0.5, %v1275_v10 }
 0x788   :  { %v485_v44 = vadd.f32 0.5, %v484_v43 }
 0x78a   :  { %v486_v56 = vmul.f32 %v485_v44, %v381_v11 }
 0x7b4   :  { %v536_v41 = vpop.permute.xlu1 %535 }
 0x7b5   :  { %v538_v42 = vmul.f32 %v536_v41, %v532_v40 }
 0x7b7   :  { %540 = vrot.lane.b32.xlu0 %v538_v42, %s1317_s29 }
 0x7e0   :  { %v489_v50 = vpop.permute.xlu2 %488 }
 0x7e1   :  { %v491_v51 = vmul.f32 %v489_v50, %v485_v44 }
 0x7e3   :  { %493 = vrot.lane.b32.xlu1 %v491_v51, %s1317_s29 }
 0x829   :  { %v541_v9 = vpop.permute.xlu0 %540 }
 0x82a   :  { %v543_v54 = vadd.f32 %v541_v9, %v533_v52 }
 0x82c   :  { %1276 = vtanh.f32 %v543_v54 }
 0x832   :  { %v1277_v55 = vpop.eup %1276 }
 0x833   :  { %546 = vrot.lane.b32.xlu2 %v1277_v55, %s1316_s26 }
 0x855   :  { %v494_v57 = vpop.permute.xlu1 %493 }
 0x856   :  { %v496_v58 = vadd.f32 %v494_v57, %v486_v56 }
 0x858   :  { %1278 = vtanh.f32 %v496_v58 }
 0x85e   :  { %v1279_v59 = vpop.eup %1278 }
 0x85f   :  { %499 = vrot.lane.b32.xlu0 %v1279_v59, %s1316_s26 }
 0x88d   :  { %v547_v60 = vpop.permute.xlu2 %546 }
 0x88e   :  { %v549_v61 = vmul.f32 %v547_v60, %v532_v40 }
 0x890   :  { %551 = vrot.lane.b32.xlu1 %v549_v61, %s1317_s29 }
 0x8d1   :  { %v500_v62 = vpop.permute.xlu0 %499 }
 0x8d2   :  { %v502_v63 = vmul.f32 %v500_v62, %v485_v44 }
 0x8d4   :  { %504 = vrot.lane.b32.xlu2 %v502_v63, %s1317_s29 }
 0x902   :  { %v552_v0 = vpop.permute.xlu1 %551 }
 0x903   :  { %1219 = vmatmul.msk.f32.vlgmr.msra.gmra.mxu2 %vm148_vm1, %v552_v0  ;;  %1221 = vmatmul.msk.f32.vlgmr.msrb.gmra.mxu1 %vm148_vm1, %v552_v0 }
 0x904   :  { %797 = vmatpush.msra.mxu2 %v1466_v28  ;;  %866 = vmatpush.msrb.mxu1 %v1398_v2 }
 0x906   :  { %798 = vmatpush.msra.mxu2 %v1481_v31  ;;  %867 = vmatpush.msrb.mxu1 %v1404_v3 }
 0x908   :  { %799 = vmatpush.msra.mxu2 %v1493_v33  ;;  %868 = vmatpush.msrb.mxu1 %v1414_v5 }
 0x90a   :  { %800 = vmatpush.msra.mxu2 %v1508_v36  ;;  %869 = vmatpush.msrb.mxu1 %v1420_v6 }
 0x92e   :  { %v505_v1 = vpop.permute.xlu2 %504 }
 0x92f   :  { %507 = vst.msk [vmem:[#allocation3 + $0x10] sm:$0xff] %vm148_vm1, %v505_v1  ;;  %1220 = vmatmul.msk.f32.vlgmr.msra.gmra.mxu3 %vm148_vm1, %v505_v1 }
 0x930   :  { %819 = vmatpush.msra.mxu3 %v1476_v30 }
 0x932   :  { %820 = vmatpush.msra.mxu3 %v1486_v32 }
 0x934   :  { %821 = vmatpush.msra.mxu3 %v1498_v34 }
 0x936   :  { %v1100_v4 = vld [vmem:[#allocation3 + $0x10] sm:$0xff]  ;;  %822 = vmatpush.msra.mxu3 %v1514_v37 }
 0x937   :  { %1237 = vmatmul.msk.f32.gmra.mxu0 %vm148_vm1, %v1100_v4 }
 0x980   :  { %v641_v8 = vpop.f32.mrf.mxu1 }
 0x981   :  { %v644_v11 = vadd.f32 %v641_v8, %v109_v7 }
 0x983   :  { %1280 = vtanh.f32 %v644_v11 }
 0x986   :  { %v572_v15 = vpop.f32.mrf.mxu2 }
 0x987   :  { %v573_v16 = vadd.f32 %v1571_v53, %v572_v15 }
 0x989   :  { %v1281_v14 = vpop.eup %1280 }
 0x98a   :  { %650 = vrot.lane.b32.xlu0 %v1281_v14, %s1316_s26  ;;  %v646_v20 = vmul.f32 0.5, %v1281_v14 }
 0x98c   :  { %v647_v21 = vadd.f32 0.5, %v646_v20 }
 0x98e   :  { %v648_v29 = vmul.f32 %v647_v21, %v543_v54 }
 0x9b2   :  { %v594_v17 = vpop.f32.mrf.mxu3 }
 0x9b3   :  { %v597_v13 = vadd.f32 %v594_v17, %v573_v16 }
 0x9b4   :  { %v1161_v19 = vpop.f32.mrf.mxu0 }
 0x9b5   :  { %1282 = vtanh.f32 %v597_v13  ;;  %v1162_v18 = vadd.f32 %v1625_v47, %v1161_v19 }
 0x9b7   :  { %1181 = vst [vmem:[%s1830_s11 + $0x10] sm:$0xff] %v1162_v18 }
 0x9bb   :  { %v1283_v45 = vpop.eup %1282 }
 0x9bc   :  { %603 = vrot.lane.b32.xlu1 %v1283_v45, %s1316_s26  ;;  %v599_v24 = vmul.f32 0.5, %v1283_v45 }
 0x9be   :  { %v600_v25 = vadd.f32 0.5, %v599_v24 }
 0x9c0   :  { %v601_v39 = vmul.f32 %v600_v25, %v496_v58 }
 0x9fc   :  { %v651_v22 = vpop.permute.xlu0 %650 }
 0x9fd   :  { %v653_v23 = vmul.f32 %v651_v22, %v647_v21 }
 0x9ff   :  { %655 = vrot.lane.b32.xlu2 %v653_v23, %s1317_s29 }
 0xa2e   :  { %v604_v26 = vpop.permute.xlu1 %603 }
 0xa2f   :  { %v606_v27 = vmul.f32 %v604_v26, %v600_v25 }
 0xa31   :  { %608 = vrot.lane.b32.xlu0 %v606_v27, %s1317_s29 }
 0xa59   :  { %v656_v35 = vpop.permute.xlu2 %655 }
 0xa5a   :  { %v658_v38 = vadd.f32 %v656_v35, %v648_v29 }
 0xa5c   :  { %1284 = vtanh.f32 %v658_v38 }
 0xa62   :  { %v1285_v10 = vpop.eup %1284 }
 0xa63   :  { %661 = vrot.lane.b32.xlu1 %v1285_v10, %s1316_s26 }
 0xaa3   :  { %v609_v40 = vpop.permute.xlu0 %608 }
 0xaa4   :  { %v611_v41 = vadd.f32 %v609_v40, %v601_v39 }
 0xaa6   :  { %1286 = vtanh.f32 %v611_v41 }
 0xaac   :  { %v1287_v42 = vpop.eup %1286 }
 0xaad   :  { %614 = vrot.lane.b32.xlu2 %v1287_v42, %s1316_s26 }
 0xad5   :  { %v662_v43 = vpop.permute.xlu1 %661 }
 0xad6   :  { %v664_v44 = vmul.f32 %v662_v43, %v647_v21 }
 0xad8   :  { %666 = vrot.lane.b32.xlu0 %v664_v44, %s1317_s29 }
 0xb07   :  { %v615_v50 = vpop.permute.xlu2 %614 }
 0xb08   :  { %v617_v51 = vmul.f32 %v615_v50, %v600_v25 }
 0xb0a   :  { %619 = vrot.lane.b32.xlu1 %v617_v51, %s1317_s29 }
 0xb4a   :  { %v667_v52 = vpop.permute.xlu0 %666 }
 0xb4b   :  { %1222 = vmatmul.msk.f32.vlgmr.msrb.gmra.mxu2 %vm148_vm1, %v667_v52  ;;  %1224 = vmatmul.msk.f32.vlgmr.msra.gmra.mxu1 %vm148_vm1, %v667_v52 }
 0xb4c   :  { %912 = vmatpush.msrb.mxu2 %v1466_v28  ;;  %981 = vmatpush.msra.mxu1 %v1398_v2 }
 0xb4e   :  { %913 = vmatpush.msrb.mxu2 %v1481_v31  ;;  %982 = vmatpush.msra.mxu1 %v1404_v3  ;;  %v112_v3 = vadd.f32 %v1447_v12, %v1563_v48 }
 0xb50   :  { %914 = vmatpush.msrb.mxu2 %v1493_v33  ;;  %983 = vmatpush.msra.mxu1 %v1414_v5 }
 0xb52   :  { %915 = vmatpush.msrb.mxu2 %v1508_v36  ;;  %984 = vmatpush.msra.mxu1 %v1420_v6 }
 0xb7c   :  { %v620_v9 = vpop.permute.xlu1 %619 }
 0xb7d   :  { %622 = vst.msk [vmem:[#allocation3 + $0x18] sm:$0xff] %vm148_vm1, %v620_v9  ;;  %1223 = vmatmul.msk.f32.vlgmr.msrb.gmra.mxu3 %vm148_vm1, %v620_v9 }
 0xb7e   :  { %934 = vmatpush.msrb.mxu3 %v1476_v30 }
 0xb80   :  { %935 = vmatpush.msrb.mxu3 %v1486_v32 }
 0xb82   :  { %936 = vmatpush.msrb.mxu3 %v1498_v34 }
 0xb84   :  { %v1101_v2 = vld [vmem:[#allocation3 + $0x18] sm:$0xff]  ;;  %937 = vmatpush.msrb.mxu3 %v1514_v37 }
 0xb85   :  { %1238 = vmatmul.msk.f32.gmra.mxu0 %vm148_vm1, %v1101_v2 }
 0xbc8   :  { %v756_v5 = vpop.f32.mrf.mxu1 }
 0xbc9   :  { %v759_v6 = vadd.f32 %v756_v5, %v112_v3 }
 0xbcb   :  { %1288 = vtanh.f32 %v759_v6 }
 0xbce   :  { %v687_v55 = vpop.f32.mrf.mxu2 }
 0xbcf   :  { %v688_v56 = vadd.f32 %v1571_v53, %v687_v55 }
 0xbd1   :  { %v1289_v54 = vpop.eup %1288 }
 0xbd2   :  { %765 = vrot.lane.b32.xlu2 %v1289_v54, %s1316_s26  ;;  %v761_v61 = vmul.f32 0.5, %v1289_v54 }
 0xbd4   :  { %v762_v62 = vadd.f32 0.5, %v761_v61 }
 0xbd6   :  { %v763_v11 = vmul.f32 %v762_v62, %v658_v38 }
 0xc00   :  { %v709_v57 = vpop.f32.mrf.mxu3 }
 0xc01   :  { %v712_v58 = vadd.f32 %v709_v57, %v688_v56 }
 0xc02   :  { %v1164_v59 = vpop.f32.mrf.mxu0 }
 0xc03   :  { %1290 = vtanh.f32 %v712_v58  ;;  %v1165_v60 = vadd.f32 %v1625_v47, %v1164_v59  ;;  %v118_v59 = vadd.f32 %v1447_v12, %v1565_v49 }
 0xc05   :  { %1182 = vst [vmem:[%s1830_s11 + $0x18] sm:$0xff] %v1165_v60 }
 0xc09   :  { %v1291_v48 = vpop.eup %1290 }
 0xc0a   :  { %718 = vrot.lane.b32.xlu0 %v1291_v48, %s1316_s26  ;;  %v714_v1 = vmul.f32 0.5, %v1291_v48 }
 0xc0c   :  { %v715_v4 = vadd.f32 0.5, %v714_v1 }
 0xc0e   :  { %v716_v17 = vmul.f32 %v715_v4, %v611_v41 }
 0xc2c   :  { %v766_v63 = vpop.permute.xlu2 %765 }
 0xc2d   :  { %v768_v0 = vmul.f32 %v766_v63, %v762_v62 }
 0xc2f   :  { %770 = vrot.lane.b32.xlu1 %v768_v0, %s1317_s29 }
 0xc7c   :  { %v719_v7 = vpop.permute.xlu0 %718 }
 0xc7d   :  { %v721_v8 = vmul.f32 %v719_v7, %v715_v4 }
 0xc7f   :  { %723 = vrot.lane.b32.xlu2 %v721_v8, %s1317_s29 }
 0xca1   :  { %v771_v14 = vpop.permute.xlu1 %770 }
 0xca2   :  { %v773_v15 = vadd.f32 %v771_v14, %v763_v11 }
 0xca4   :  { %1292 = vtanh.f32 %v773_v15 }
 0xcaa   :  { %v1293_v16 = vpop.eup %1292 }
 0xcab   :  { %776 = vrot.lane.b32.xlu0 %v1293_v16, %s1316_s26 }
 0xcd9   :  { %v724_v13 = vpop.permute.xlu2 %723 }
 0xcda   :  { %v726_v19 = vadd.f32 %v724_v13, %v716_v17 }
 0xcdc   :  { %1294 = vtanh.f32 %v726_v19 }
 0xce2   :  { %v1295_v18 = vpop.eup %1294 }
 0xce3   :  { %729 = vrot.lane.b32.xlu1 %v1295_v18, %s1316_s26 }
 0xd1d   :  { %v777_v45 = vpop.permute.xlu0 %776 }
 0xd1e   :  { %v779_v20 = vmul.f32 %v777_v45, %v762_v62 }
 0xd20   :  { %781 = vrot.lane.b32.xlu2 %v779_v20, %s1317_s29 }
 0xd55   :  { %v730_v21 = vpop.permute.xlu1 %729 }
 0xd56   :  { %v732_v22 = vmul.f32 %v730_v21, %v715_v4 }
 0xd58   :  { %734 = vrot.lane.b32.xlu0 %v732_v22, %s1317_s29 }
 0xd7a   :  { %v782_v23 = vpop.permute.xlu2 %781 }
 0xd7b   :  { %1225 = vmatmul.msk.f32.vlgmr.msra.gmra.mxu2 %vm148_vm1, %v782_v23  ;;  %1227 = vmatmul.msk.f32.vlgmr.msrb.gmra.mxu1 %vm148_vm1, %v782_v23 }
 0xd7c   :  { %1027 = vmatpush.msra.mxu2 %v1466_v28  ;;  %v115_v28 = vadd.f32 %v1447_v12, %v1561_v46 }
 0xd7e   :  { %1028 = vmatpush.msra.mxu2 %v1481_v31 }
 0xd80   :  { %1029 = vmatpush.msra.mxu2 %v1493_v33 }
 0xd82   :  { %1030 = vmatpush.msra.mxu2 %v1508_v36 }
 0xdca   :  { %v735_v24 = vpop.permute.xlu0 %734 }
 0xdcb   :  { %737 = vst.msk [vmem:[#allocation3 + $0x20] sm:$0xff] %vm148_vm1, %v735_v24  ;;  %1226 = vmatmul.msk.f32.vlgmr.msra.gmra.mxu3 %vm148_vm1, %v735_v24 }
 0xdcc   :  { %1049 = vmatpush.msra.mxu3 %v1476_v30 }
 0xdce   :  { %1050 = vmatpush.msra.mxu3 %v1486_v32 }
 0xdd0   :  { %1051 = vmatpush.msra.mxu3 %v1498_v34 }
 0xdd2   :  { %v1102_v25 = vld [vmem:[#allocation3 + $0x20] sm:$0xff]  ;;  %1052 = vmatpush.msra.mxu3 %v1514_v37 }
 0xdd3   :  { %1239 = vmatmul.msk.f32.gmra.mxu0 %vm148_vm1, %v1102_v25 }
 0xdf8   :  { %v871_v31 = vpop.f32.mrf.mxu1 }
 0xdf9   :  { %v874_v33 = vadd.f32 %v871_v31, %v115_v28 }
 0xdfb   :  { %1296 = vtanh.f32 %v874_v33 }
 0xdfe   :  { %v802_v26 = vpop.f32.mrf.mxu2 }
 0xdff   :  { %v803_v30 = vadd.f32 %v1571_v53, %v802_v26 }
 0xe01   :  { %v1297_v36 = vpop.eup %1296 }
 0xe02   :  { %880 = vrot.lane.b32.xlu1 %v1297_v36, %s1316_s26  ;;  %v876_v29 = vmul.f32 0.5, %v1297_v36 }
 0xe04   :  { %v877_v35 = vadd.f32 0.5, %v876_v29 }
 0xe06   :  { %v878_v43 = vmul.f32 %v877_v35, %v773_v15 }
 0xe4e   :  { %v824_v32 = vpop.f32.mrf.mxu3 }
 0xe4f   :  { %v827_v27 = vadd.f32 %v824_v32, %v803_v30 }
 0xe50   :  { %v1167_v34 = vpop.f32.mrf.mxu0 }
 0xe51   :  { %1298 = vtanh.f32 %v827_v27  ;;  %v1168_v37 = vadd.f32 %v1625_v47, %v1167_v34 }
 0xe53   :  { %1183 = vst [vmem:[%s1830_s11 + $0x20] sm:$0xff] %v1168_v37 }
 0xe57   :  { %v1299_v46 = vpop.eup %1298 }
 0xe58   :  { %833 = vrot.lane.b32.xlu2 %v1299_v46, %s1316_s26  ;;  %v829_v39 = vmul.f32 0.5, %v1299_v46 }
 0xe5a   :  { %v830_v40 = vadd.f32 0.5, %v829_v39 }
 0xe5c   :  { %v831_v52 = vmul.f32 %v830_v40, %v726_v19 }
 0xe74   :  { %v881_v38 = vpop.permute.xlu1 %880 }
 0xe75   :  { %v883_v10 = vmul.f32 %v881_v38, %v877_v35 }
 0xe77   :  { %885 = vrot.lane.b32.xlu0 %v883_v10, %s1317_s29 }
 0xeb2   :  { %v834_v41 = vpop.permute.xlu2 %833 }
 0xeb3   :  { %v836_v42 = vmul.f32 %v834_v41, %v830_v40 }
 0xeb5   :  { %838 = vrot.lane.b32.xlu1 %v836_v42, %s1317_s29 }
 0xee9   :  { %v886_v44 = vpop.permute.xlu0 %885 }
 0xeea   :  { %v888_v50 = vadd.f32 %v886_v44, %v878_v43 }
 0xeec   :  { %1300 = vtanh.f32 %v888_v50 }
 0xef2   :  { %v1301_v51 = vpop.eup %1300 }
 0xef3   :  { %891 = vrot.lane.b32.xlu2 %v1301_v51, %s1316_s26 }
 0xf27   :  { %v839_v9 = vpop.permute.xlu1 %838 }
 0xf28   :  { %v841_v2 = vadd.f32 %v839_v9, %v831_v52 }
 0xf2a   :  { %1302 = vtanh.f32 %v841_v2 }
 0xf30   :  { %v1303_v3 = vpop.eup %1302 }
 0xf31   :  { %844 = vrot.lane.b32.xlu0 %v1303_v3, %s1316_s26 }
 0xf4d   :  { %v892_v5 = vpop.permute.xlu2 %891 }
 0xf4e   :  { %v894_v6 = vmul.f32 %v892_v5, %v877_v35 }
 0xf50   :  { %896 = vrot.lane.b32.xlu1 %v894_v6, %s1317_s29 }
 0xfa3   :  { %v845_v54 = vpop.permute.xlu0 %844 }
 0xfa4   :  { %v847_v55 = vmul.f32 %v845_v54, %v830_v40 }
 0xfa6   :  { %849 = vrot.lane.b32.xlu2 %v847_v55, %s1317_s29 }
 0xfc2   :  { %v897_v56 = vpop.permute.xlu1 %896 }
 0xfc3   :  { %1228 = vmatmul.msk.f32.vlgmr.msrb.gmra.mxu2 %vm148_vm1, %v897_v56  ;;  %1230 = vmatmul.msk.f32.vlgmr.msra.gmra.mxu1 %vm148_vm1, %v897_v56 }
0x1000   :  { %v850_v57 = vpop.permute.xlu2 %849 }
0x1001   :  { %852 = vst.msk [vmem:[#allocation3 + $0x28] sm:$0xff] %vm148_vm1, %v850_v57  ;;  %1229 = vmatmul.msk.f32.vlgmr.msrb.gmra.mxu3 %vm148_vm1, %v850_v57 }
0x1008   :  { %v1103_v58 = vld [vmem:[#allocation3 + $0x28] sm:$0xff] }
0x1009   :  { %1240 = vmatmul.msk.f32.gmra.mxu0 %vm148_vm1, %v1103_v58 }
0x1040   :  { %v986_v60 = vpop.f32.mrf.mxu1 }
0x1041   :  { %v989_v48 = vadd.f32 %v986_v60, %v118_v59 }
0x1043   :  { %1304 = vtanh.f32 %v989_v48 }
0x1046   :  { %v917_v62 = vpop.f32.mrf.mxu2 }
0x1047   :  { %v918_v63 = vadd.f32 %v1571_v53, %v917_v62 }
0x1049   :  { %v1305_v61 = vpop.eup %1304 }
0x104a   :  { %995 = vrot.lane.b32.xlu0 %v1305_v61, %s1316_s26  ;;  %v991_v49 = vmul.f32 0.5, %v1305_v61 }
0x104c   :  { %v992_v8 = vadd.f32 0.5, %v991_v49 }
0x104e   :  { %v993_v19 = vmul.f32 %v992_v8, %v888_v50 }
0x1084   :  { %v939_v0 = vpop.f32.mrf.mxu3 }
0x1085   :  { %v942_v1 = vadd.f32 %v939_v0, %v918_v63 }
0x1086   :  { %v1170_v4 = vpop.f32.mrf.mxu0 }
0x1087   :  { %1306 = vtanh.f32 %v942_v1  ;;  %v1171_v7 = vadd.f32 %v1625_v47, %v1170_v4 }
0x1089   :  { %1184 = vst [vmem:[%s1830_s11 + $0x28] sm:$0xff] %v1171_v7 }
0x108d   :  { %v1307_v12 = vpop.eup %1306 }
0x108e   :  { %948 = vrot.lane.b32.xlu1 %v1307_v12, %s1316_s26  ;;  %v944_v15 = vmul.f32 0.5, %v1307_v12 }
0x1090   :  { %v945_v16 = vadd.f32 0.5, %v944_v15 }
0x1092   :  { %v946_v21 = vmul.f32 %v945_v16, %v841_v2 }
0x10bc   :  { %v996_v11 = vpop.permute.xlu0 %995 }
0x10bd   :  { %v998_v14 = vmul.f32 %v996_v11, %v992_v8 }
0x10bf   :  { %1000 = vrot.lane.b32.xlu2 %v998_v14, %s1317_s29 }
0x1100   :  { %v949_v17 = vpop.permute.xlu1 %948 }
0x1101   :  { %v951_v13 = vmul.f32 %v949_v17, %v945_v16 }
0x1103   :  { %953 = vrot.lane.b32.xlu0 %v951_v13, %s1317_s29 }
0x1119   :  { %v1001_v18 = vpop.permute.xlu2 %1000 }
0x111a   :  { %v1003_v45 = vadd.f32 %v1001_v18, %v993_v19 }
0x111c   :  { %1308 = vtanh.f32 %v1003_v45 }
0x1122   :  { %v1309_v20 = vpop.eup %1308 }
0x1123   :  { %1006 = vrot.lane.b32.xlu1 %v1309_v20, %s1316_s26 }
0x1175   :  { %v954_v22 = vpop.permute.xlu0 %953 }
0x1176   :  { %v956_v23 = vadd.f32 %v954_v22, %v946_v21 }
0x1178   :  { %1310 = vtanh.f32 %v956_v23 }
0x117e   :  { %v1311_v24 = vpop.eup %1310 }
0x117f   :  { %959 = vrot.lane.b32.xlu2 %v1311_v24, %s1316_s26 }
0x1195   :  { %v1007_v25 = vpop.permute.xlu1 %1006 }
0x1196   :  { %v1009_v28 = vmul.f32 %v1007_v25, %v992_v8 }
0x1198   :  { %1011 = vrot.lane.b32.xlu0 %v1009_v28, %s1317_s29 }
0x11d9   :  { %v960_v31 = vpop.permute.xlu2 %959 }
0x11da   :  { %v962_v33 = vmul.f32 %v960_v31, %v945_v16 }
0x11dc   :  { %964 = vrot.lane.b32.xlu1 %v962_v33, %s1317_s29 }
0x120a   :  { %v1012_v36 = vpop.permute.xlu0 %1011 }
0x120b   :  { %1084 = vst.msk [vmem:[%s1831_s12] sm:$0xff] %vm148_vm1, %v1012_v36  ;;  %1231 = vmatmul.msk.f32.vlgmr.msra.gmra.mxu2 %vm148_vm1, %v1012_v36 }
0x124e   :  { %v965_v26 = vpop.permute.xlu1 %964 }
0x124f   :  { %967 = vst.msk [vmem:[#allocation3 + $0x30] sm:$0xff] %vm148_vm1, %v965_v26  ;;  %1232 = vmatmul.msk.f32.vlgmr.msra.gmra.mxu3 %vm148_vm1, %v965_v26 }
0x1256   :  { %v1104_v30 = vld [vmem:[#allocation3 + $0x30] sm:$0xff] }
0x1257   :  { %1241 = vmatmul.msk.f32.gmra.mxu0 %vm148_vm1, %v1104_v30 }
0x128e   :  { %v1032_v32 = vpop.f32.mrf.mxu2 }
0x128f   :  { %v1033_v27 = vadd.f32 %v1571_v53, %v1032_v32 }
0x12d2   :  { %v1054_v34 = vpop.f32.mrf.mxu3 }
0x12d3   :  { %v1057_v37 = vadd.f32 %v1054_v34, %v1033_v27 }
0x12d4   :  { %v1173_v46 = vpop.f32.mrf.mxu0 }
0x12d5   :  { %1312 = vtanh.f32 %v1057_v37  ;;  %v1174_v29 = vadd.f32 %v1625_v47, %v1173_v46 }
0x12d7   :  { %1185 = vst [vmem:[%s1830_s11 + $0x30] sm:$0xff] %v1174_v29 }
0x12db   :  { %v1313_v35 = vpop.eup %1312 }
0x12dc   :  { %1063 = vrot.lane.b32.xlu2 %v1313_v35, %s1316_s26  ;;  %v1059_v38 = vmul.f32 0.5, %v1313_v35 }
0x12de   :  { %v1060_v10 = vadd.f32 0.5, %v1059_v38 }
0x12e0   :  { %v1061_v53 = vmul.f32 %v1060_v10, %v956_v23 }
0x1336   :  { %v1064_v39 = vpop.permute.xlu2 %1063 }
0x1337   :  { %v1066_v40 = vmul.f32 %v1064_v39, %v1060_v10 }
0x1339   :  { %1068 = vrot.lane.b32.xlu0 %v1066_v40, %s1317_s29 }
0x1341   :  { %1086 = vrot.lane.b32.xlu0 %v1003_v45, %s1318_s6 }
0x13ab   :  { %v1069_v41 = vpop.permute.xlu0 %1068 }
0x13ac   :  { %v1071_v42 = vadd.f32 %v1069_v41, %v1061_v53 }
0x13ae   :  { %1314 = vtanh.f32 %v1071_v42 }
0x13b3   :  { %v1087_v43 = vpop.permute.xlu0 %1086 }
0x13b4   :  { %v1315_v44 = vpop.eup %1314  ;;  %1089 = vst.msk [vmem:[%s1832_s13] sm:$0xff] %vm148_vm1, %v1087_v43 }
0x13b5   :  { %1074 = vrot.lane.b32.xlu1 %v1315_v44, %s1316_s26 }
0x13bd   :  { %1093 = vrot.lane.b32.xlu1 %v1071_v42, %s1318_s6 }
0x1427   :  { %v1075_v50 = vpop.permute.xlu1 %1074 }
0x1428   :  { %v1077_v51 = vmul.f32 %v1075_v50, %v1060_v10 }
0x142a   :  { %1079 = vrot.lane.b32.xlu2 %v1077_v51, %s1317_s29 }
0x142f   :  { %v1094_v52 = vpop.permute.xlu1 %1093 }
0x1430   :  { %1234 = vst.msk [vmem:[%s1832_s13 + $0x8] sm:$0xff] %vm148_vm1, %v1094_v52 }
0x1484   :  { %v1080_v9 = vpop.permute.xlu2 %1079 }
0x1485   :  { %1082 = vst.msk [vmem:[#allocation3 + $0x38] sm:$0xff] %vm148_vm1, %v1080_v9 }
0x1486   :  { %1233 = vst.msk [vmem:[%s1831_s12 + $0x8] sm:$0xff] %vm148_vm1, %v1080_v9 }
0x148c   :  { %v1105_v2 = vld [vmem:[#allocation3 + $0x38] sm:$0xff] }
0x148d   :  { %1242 = vmatmul.msk.f32.gmra.mxu0 %vm148_vm1, %v1105_v2 }
0x150a   :  { %v1176_v3 = vpop.f32.mrf.mxu0 }
0x150b   :  { %v1177_v5 = vadd.f32 %v1625_v47, %v1176_v3 }
0x150d   :  { %1186 = vst [vmem:[%s1830_s11 + $0x38] sm:$0xff] %v1177_v5 }

</bundles_post_ra>
